<compile_context>
chip_gen: v6e
topology: v6e:2x2x1
jax: 0.10.0
libtpu: 0.0.40
codegen_flags: <defaults>
</compile_context>

<pallas_src>
from math import floor

import jax
import jax.numpy as jnp
from jax.experimental import pallas as pl
from jax.experimental.pallas import tpu as pltpu


def new_seq(seq_len, kernel, stride=1):
    return floor((seq_len - kernel) / stride + 1)


def _ds(start, size, stride):
    """Static-start row window; strided only when stride > 1."""
    return pl.ds(start, size) if stride == 1 else pl.ds(start, size, stride)


# ----------------------------------------------------------------------------
# Fused kernel
# ----------------------------------------------------------------------------

def make_cnn_kernel(*, b_tile, channels, f1, f2, k1, k2, p1, p2, s1, s2,
                    l1, q1, l2, q2, has_fc3):
    """Whole CNN forward for one batch tile of `b_tile` samples.

    refs (in order):
      x_ref    : (b_tile, L, C)        input, channels-last
      w1_ref   : (k1*C, f1)  b1_ref: (1, f1)      im2col conv1 weight/bias
      w2_ref   : (k2*f1, f2) b2_ref: (1, f2)      im2col conv2 weight/bias
      fc1w_ref : (q2*f2, h1) fc1b_ref: (1, h1)    rows pre-permuted for the flatten
      fc2w_ref : (h1, n2)    fc2b_ref: (1, n2)
      [fc3w_ref: (h2, out)   fc3b_ref: (1, out)]  only when h2 is not None
      o_ref    : (b_tile, outputs)
    scratch:
      xc1_scr (l1, k1*C), a1_scr (l1, f1), p1_scr (q1, f1),
      xc2_scr (l2, k2*f1), a2_scr (b_tile*l2, f2), flat_scr (b_tile, q2*f2)
    """
    C = channels

    def kernel(*refs):
        if has_fc3:
            (x_ref, w1_ref, b1_ref, w2_ref, b2_ref,
             fc1w_ref, fc1b_ref, fc2w_ref, fc2b_ref,
             fc3w_ref, fc3b_ref, o_ref,
             xc1_scr, a1_scr, p1_scr, xc2_scr, a2_scr, flat_scr) = refs
        else:
            (x_ref, w1_ref, b1_ref, w2_ref, b2_ref,
             fc1w_ref, fc1b_ref, fc2w_ref, fc2b_ref, o_ref,
             xc1_scr, a1_scr, p1_scr, xc2_scr, a2_scr, flat_scr) = refs

        w1 = w1_ref[...]                      # (k1*C, f1)   hoisted out of the loop
        b1 = b1_ref[...]                      # (1, f1)
        w2 = w2_ref[...]                      # (k2*f1, f2)
        b2 = b2_ref[...]                      # (1, f2)

        # ---- conv1+relu -> pool1 -> conv2+relu  (per sample, results kept in VMEM)
        for b in range(b_tile):               # static unroll over the batch tile
            # im2col for conv1: column block k holds x[b, k + i*s1, :]
            for k in range(k1):
                xc1_scr[:, k * C:(k + 1) * C] = x_ref[b, _ds(k, l1, s1), :]
            a1 = jnp.dot(xc1_scr[...], w1, preferred_element_type=jnp.float32) + b1
            a1_scr[...] = jnp.maximum(a1, 0.0)                      # (l1, f1)

            # pool1 (kernel = stride = p1, floor mode): max over strided row views
            if p1 == 1:
                p1_scr[...] = a1_scr[...]
            else:
                pooled = a1_scr[_ds(0, q1, p1), :]
                for j in range(1, p1):
                    pooled = jnp.maximum(pooled, a1_scr[_ds(j, q1, p1), :])
                p1_scr[...] = pooled                                # (q1, f1)

            # im2col for conv2 (stride s2 folded into the row gather)
            for k in range(k2):
                xc2_scr[:, k * f1:(k + 1) * f1] = p1_scr[_ds(k, l2, s2), :]
            a2 = jnp.dot(xc2_scr[...], w2, preferred_element_type=jnp.float32) + b2
            a2_scr[b * l2:(b + 1) * l2, :] = jnp.maximum(a2, 0.0)   # rows b*l2..(b+1)*l2

        # ---- pool2 + flatten for the whole tile ------------------------------
        # flat[:, l*f2:(l+1)*f2] = max_j a2[:, l*p2 + j, :].  fc1_w rows were
        # permuted at init so this position-major layout matches PyTorch's
        # channel-major x.view(N, -1); no runtime transpose needed.
        for l in range(q2):
            piece = a2_scr[_ds(l * p2, b_tile, l2), :]
            for j in range(1, p2):
                piece = jnp.maximum(piece, a2_scr[_ds(l * p2 + j, b_tile, l2), :])
            flat_scr[:, l * f2:(l + 1) * f2] = piece                # (b_tile, f2)

        # ---- MLP head (single matmuls over the whole tile) -------------------
        h = jnp.tanh(jnp.dot(flat_scr[...], fc1w_ref[...],
                             preferred_element_type=jnp.float32) + fc1b_ref[...])
        y = jnp.dot(h, fc2w_ref[...],
                    preferred_element_type=jnp.float32) + fc2b_ref[...]
        if has_fc3:
            y = jnp.tanh(y)
            y = jnp.dot(y, fc3w_ref[...],
                        preferred_element_type=jnp.float32) + fc3b_ref[...]
        o_ref[...] = y

    return kernel


# ----------------------------------------------------------------------------
# Wrapper
# ----------------------------------------------------------------------------

def cnn_forward(x_ncl, params, cfg):
    """x_ncl: (N, channels, seq_len) float32 (same layout as PyTorch Conv1d input)."""
    f1, f2, h1, h2 = cfg["f1"], cfg["f2"], cfg["h1"], cfg["h2"]
    k1, k2, p1, p2 = cfg["k1"], cfg["k2"], cfg["p1"], cfg["p2"]
    g1, g2, s1, s2 = cfg["g1"], cfg["g2"], cfg["s1"], cfg["s2"]
    outputs = cfg["outputs"]
    assert g1 == 1 and g2 == 1  # TODO(synk): grouped Conv1d (groups > 1) not implemented

    N, C, L = x_ncl.shape
    l1 = new_seq(L, k1, s1)      # conv1 output length
    q1 = new_seq(l1, p1, p1)     # pool1 output length
    l2 = new_seq(q1, k2, s2)     # conv2 output length
    q2 = new_seq(l2, p2, p2)     # pool2 output length
    n2 = outputs if h2 is None else h2

    # batch tiling: whole batch in one step when small; otherwise tiles of 8
    # (keeps the output block (8, ...) divisible per the (8,128) rule and gives
    #  >=2 parallel grid steps for the two v7x TensorCores at realistic batch).
    if N <= 8:
        b_tile, n_pad = N, N
    else:
        b_tile = 8
        n_pad = ((N + b_tile - 1) // b_tile) * b_tile

    x_nlc = jnp.transpose(x_ncl, (0, 2, 1))       # single relayout of the raw input
    if n_pad != N:
        x_nlc = jnp.pad(x_nlc, ((0, n_pad - N), (0, 0), (0, 0)))

    kernel = make_cnn_kernel(b_tile=b_tile, channels=C, f1=f1, f2=f2,
                             k1=k1, k2=k2, p1=p1, p2=p2, s1=s1, s2=s2,
                             l1=l1, q1=q1, l2=l2, q2=q2, has_fc3=(h2 is not None))

    in_specs = [pl.BlockSpec((b_tile, L, C), lambda g: (g, 0, 0)),
                pl.BlockSpec((k1 * C, f1), lambda g: (0, 0)),
                pl.BlockSpec((1, f1), lambda g: (0, 0)),
                pl.BlockSpec((k2 * f1, f2), lambda g: (0, 0)),
                pl.BlockSpec((1, f2), lambda g: (0, 0)),
                pl.BlockSpec((q2 * f2, h1), lambda g: (0, 0)),
                pl.BlockSpec((1, h1), lambda g: (0, 0)),
                pl.BlockSpec((h1, n2), lambda g: (0, 0)),
                pl.BlockSpec((1, n2), lambda g: (0, 0))]
    args = [x_nlc, params["w1"], params["b1"], params["w2"], params["b2"],
            params["fc1_w"], params["fc1_b"], params["fc2_w"], params["fc2_b"]]
    if h2 is not None:
        in_specs += [pl.BlockSpec((h2, outputs), lambda g: (0, 0)),
                     pl.BlockSpec((1, outputs), lambda g: (0, 0))]
        args += [params["fc3_w"], params["fc3_b"]]

    out = pl.pallas_call(
        kernel,
        grid=(n_pad // b_tile,),
        in_specs=in_specs,
        out_specs=pl.BlockSpec((b_tile, outputs), lambda g: (g, 0)),
        out_shape=jax.ShapeDtypeStruct((n_pad, outputs), jnp.float32),
        scratch_shapes=[pltpu.VMEM((l1, k1 * C), jnp.float32),      # conv1 im2col
                        pltpu.VMEM((l1, f1), jnp.float32),          # conv1+relu
                        pltpu.VMEM((q1, f1), jnp.float32),          # pool1
                        pltpu.VMEM((l2, k2 * f1), jnp.float32),     # conv2 im2col
                        pltpu.VMEM((b_tile * l2, f2), jnp.float32),  # conv2+relu (tile)
                        pltpu.VMEM((b_tile, q2 * f2), jnp.float32)],  # flatten slab
        compiler_params=pltpu.CompilerParams(
            dimension_semantics=("parallel",)),
    )(*args)
    return out[:N]


# ----------------------------------------------------------------------------
# Parameters: PyTorch-shaped tensors + one-time re-layout for the kernel
# ----------------------------------------------------------------------------

def init_torch_params(key, cfg, channels, seq_len):
    f1, f2, h1, h2 = cfg["f1"], cfg["f2"], cfg["h1"], cfg["h2"]
    k1, k2, p1, p2 = cfg["k1"], cfg["k2"], cfg["p1"], cfg["p2"]
    s1, s2, outputs = cfg["s1"], cfg["s2"], cfg["outputs"]
    c1 = new_seq(seq_len, k1, s1); q1 = new_seq(c1, p1, p1)
    c2 = new_seq(q1, k2, s2);      q2 = new_seq(c2, p2, p2)
    fc1_in = f2 * q2
    second = outputs if h2 is None else h2

    ks = jax.random.split(key, 10)
    s = 0.1
    tp = dict(
        w1=s * jax.random.normal(ks[0], (f1, channels, k1), jnp.float32),
        b1=s * jax.random.normal(ks[1], (f1,), jnp.float32),
        w2=s * jax.random.normal(ks[2], (f2, f1, k2), jnp.float32),
        b2=s * jax.random.normal(ks[3], (f2,), jnp.float32),
        fc1_w=s * jax.random.normal(ks[4], (h1, fc1_in), jnp.float32),
        fc1_b=s * jax.random.normal(ks[5], (h1,), jnp.float32),
        fc2_w=s * jax.random.normal(ks[6], (second, h1), jnp.float32),
        fc2_b=s * jax.random.normal(ks[7], (second,), jnp.float32),
    )
    if h2 is not None:
        tp["fc3_w"] = s * jax.random.normal(ks[8], (outputs, h2), jnp.float32)
        tp["fc3_b"] = s * jax.random.normal(ks[9], (outputs,), jnp.float32)
    return tp


def pack_params(tp, cfg, channels, seq_len):
    """Re-lay-out PyTorch-shaped weights once for the fused kernel."""
    f1, f2, h1, h2 = cfg["f1"], cfg["f2"], cfg["h1"], cfg["h2"]
    k1, k2, p1, p2 = cfg["k1"], cfg["k2"], cfg["p1"], cfg["p2"]
    s1, s2 = cfg["s1"], cfg["s2"]
    c1 = new_seq(seq_len, k1, s1); q1 = new_seq(c1, p1, p1)
    c2 = new_seq(q1, k2, s2);      q2 = new_seq(c2, p2, p2)

    kp = {
        # conv weights -> im2col layout (K*Cin, Cout), row index = k*Cin + c
        "w1": jnp.transpose(tp["w1"], (2, 1, 0)).reshape(k1 * channels, f1),
        "b1": tp["b1"].reshape(1, f1),
        "w2": jnp.transpose(tp["w2"], (2, 1, 0)).reshape(k2 * f1, f2),
        "b2": tp["b2"].reshape(1, f2),
        # fc1: PyTorch flattens (N, f2, q2) channel-major (index = c*q2 + l); the
        # kernel builds the flat slab position-major (index = l*f2 + c), so permute
        # the weight rows once here (free at runtime).
        "fc1_w": tp["fc1_w"].T.reshape(f2, q2, h1).transpose(1, 0, 2).reshape(q2 * f2, h1),
        "fc1_b": tp["fc1_b"].reshape(1, h1),
        "fc2_w": tp["fc2_w"].T,
        "fc2_b": tp["fc2_b"].reshape(1, -1),
    }
    if h2 is not None:
        kp["fc3_w"] = tp["fc3_w"].T
        kp["fc3_b"] = tp["fc3_b"].reshape(1, -1)
    return kp


# ----------------------------------------------------------------------------
# Pure-JAX reference (PyTorch semantics) for a correctness check
# ----------------------------------------------------------------------------

def reference_forward(x_ncl, tp, cfg):
    hp = jax.lax.Precision.HIGHEST
    dn = ("NCH", "OIH", "NCH")

    def pool(x, p):  # (N, C, L), kernel = stride = p, floor mode
        n, c, L = x.shape
        q = L // p
        return jnp.max(x[:, :, :q * p].reshape(n, c, q, p), axis=-1)

    a = jax.lax.conv_general_dilated(x_ncl, tp["w1"], (cfg["s1"],), "VALID",
                                     dimension_numbers=dn, precision=hp)
    a = pool(jnp.maximum(a + tp["b1"][None, :, None], 0.0), cfg["p1"])
    a = jax.lax.conv_general_dilated(a, tp["w2"], (cfg["s2"],), "VALID",
                                     dimension_numbers=dn, precision=hp)
    a = pool(jnp.maximum(a + tp["b2"][None, :, None], 0.0), cfg["p2"])
    flat = a.reshape(a.shape[0], -1)                 # channel-major, like x.view(N,-1)
    h = jnp.tanh(jnp.dot(flat, tp["fc1_w"].T, precision=hp) + tp["fc1_b"])
    y = jnp.dot(h, tp["fc2_w"].T, precision=hp) + tp["fc2_b"]
    if cfg["h2"] is not None:
        y = jnp.dot(jnp.tanh(y), tp["fc3_w"].T, precision=hp) + tp["fc3_b"]
    return y


# ----------------------------------------------------------------------------
# Demo
# ----------------------------------------------------------------------------

if __name__ == "__main__":
    cfg = dict(f1=8, f2=16, h1=32, h2=16,
               k1=5, k2=3, p1=2, p2=2,
               g1=1, g2=1, s1=1, s2=1, outputs=24)
    batch, channels, seq_len = 2, 4, 64

    key = jax.random.PRNGKey(0)
    k_x, k_p = jax.random.split(key)
    x = jax.random.normal(k_x, (batch, channels, seq_len), jnp.float32)  # NCL

    tparams = init_torch_params(k_p, cfg, channels, seq_len)
    kparams = pack_params(tparams, cfg, channels, seq_len)

    fwd = jax.jit(lambda xx, pp: cnn_forward(xx, pp, cfg))
    y = jax.block_until_ready(fwd(x, kparams))

    assert y.shape == (batch, cfg["outputs"])
    assert bool(jnp.all(jnp.isfinite(y)))

    y_ref = reference_forward(x, tparams, cfg)
    assert jnp.allclose(y, y_ref, atol=2e-3, rtol=2e-3), \
        f"max abs err = {float(jnp.max(jnp.abs(y - y_ref)))}"

    print("KERNEL_OK")
</pallas_src>

<mosaic_0001>
module attributes {stable_mosaic.version = 11 : i64} {
  func.func @kernel(%arg0: i32, %arg1: memref<2x64x4xf32, #tpu.memory_space<vmem>>, %arg2: memref<20x8xf32, #tpu.memory_space<vmem>>, %arg3: memref<1x8xf32, #tpu.memory_space<vmem>>, %arg4: memref<24x16xf32, #tpu.memory_space<vmem>>, %arg5: memref<1x16xf32, #tpu.memory_space<vmem>>, %arg6: memref<224x32xf32, #tpu.memory_space<vmem>>, %arg7: memref<1x32xf32, #tpu.memory_space<vmem>>, %arg8: memref<32x16xf32, #tpu.memory_space<vmem>>, %arg9: memref<1x16xf32, #tpu.memory_space<vmem>>, %arg10: memref<16x24xf32, #tpu.memory_space<vmem>>, %arg11: memref<1x24xf32, #tpu.memory_space<vmem>>, %arg12: memref<2x24xf32, #tpu.memory_space<vmem>>, %arg13: memref<60x20xf32, #tpu.memory_space<vmem>>, %arg14: memref<60x8xf32, #tpu.memory_space<vmem>>, %arg15: memref<30x8xf32, #tpu.memory_space<vmem>>, %arg16: memref<28x24xf32, #tpu.memory_space<vmem>>, %arg17: memref<56x16xf32, #tpu.memory_space<vmem>>, %arg18: memref<2x224xf32, #tpu.memory_space<vmem>>) attributes {dimension_semantics = [#tpu.dimension_semantics<parallel>], iteration_bounds = array<i64: 1>, scalar_prefetch = 0 : i64, scratch_operands = 6 : i64, tpu.core_type = #tpu.core_type<tc>, window_params = [{transform_indices = @transform_0, window_bounds = array<i64: 2, 64, 4>}, {pipeline_mode = #tpu.pipeline_mode<synchronous>, transform_indices = @transform_1, window_bounds = array<i64: 20, 8>}, {pipeline_mode = #tpu.pipeline_mode<synchronous>, transform_indices = @transform_2, window_bounds = array<i64: 1, 8>}, {pipeline_mode = #tpu.pipeline_mode<synchronous>, transform_indices = @transform_3, window_bounds = array<i64: 24, 16>}, {pipeline_mode = #tpu.pipeline_mode<synchronous>, transform_indices = @transform_4, window_bounds = array<i64: 1, 16>}, {pipeline_mode = #tpu.pipeline_mode<synchronous>, transform_indices = @transform_5, window_bounds = array<i64: 224, 32>}, {pipeline_mode = #tpu.pipeline_mode<synchronous>, transform_indices = @transform_6, window_bounds = array<i64: 1, 32>}, {pipeline_mode = #tpu.pipeline_mode<synchronous>, transform_indices = @transform_7, window_bounds = array<i64: 32, 16>}, {pipeline_mode = #tpu.pipeline_mode<synchronous>, transform_indices = @transform_8, window_bounds = array<i64: 1, 16>}, {pipeline_mode = #tpu.pipeline_mode<synchronous>, transform_indices = @transform_9, window_bounds = array<i64: 16, 24>}, {pipeline_mode = #tpu.pipeline_mode<synchronous>, transform_indices = @transform_10, window_bounds = array<i64: 1, 24>}, {transform_indices = @transform_11, window_bounds = array<i64: 2, 24>}]} {
    %c0 = arith.constant 0 : index
    %c0_0 = arith.constant 0 : index
    %0 = vector.load %arg2[%c0, %c0_0] : memref<20x8xf32, #tpu.memory_space<vmem>>, vector<20x8xf32>
    %c0_1 = arith.constant 0 : index
    %c0_2 = arith.constant 0 : index
    %1 = vector.load %arg3[%c0_1, %c0_2] : memref<1x8xf32, #tpu.memory_space<vmem>>, vector<1x8xf32>
    %c0_3 = arith.constant 0 : index
    %c0_4 = arith.constant 0 : index
    %2 = vector.load %arg4[%c0_3, %c0_4] : memref<24x16xf32, #tpu.memory_space<vmem>>, vector<24x16xf32>
    %c0_5 = arith.constant 0 : index
    %c0_6 = arith.constant 0 : index
    %3 = vector.load %arg5[%c0_5, %c0_6] : memref<1x16xf32, #tpu.memory_space<vmem>>, vector<1x16xf32>
    %c0_7 = arith.constant 0 : index
    %c0_8 = arith.constant 0 : index
    %c0_9 = arith.constant 0 : index
    %4 = vector.load %arg1[%c0_7, %c0_8, %c0_9] : memref<2x64x4xf32, #tpu.memory_space<vmem>>, vector<1x60x4xf32>
    %5 = vector.shape_cast %4 : vector<1x60x4xf32> to vector<60x4xf32>
    %c0_10 = arith.constant 0 : index
    %c0_11 = arith.constant 0 : index
    %6 = vector.load %arg13[%c0_10, %c0_11] : memref<60x20xf32, #tpu.memory_space<vmem>>, vector<60x4xf32>
    tpu.vector_store %arg13[%c0_10, %c0_11], %5 {strides = array<i32>} : memref<60x20xf32, #tpu.memory_space<vmem>>, vector<60x4xf32>,
    %c0_12 = arith.constant 0 : index
    %c1 = arith.constant 1 : index
    %c0_13 = arith.constant 0 : index
    %7 = vector.load %arg1[%c0_12, %c1, %c0_13] : memref<2x64x4xf32, #tpu.memory_space<vmem>>, vector<1x60x4xf32>
    %8 = vector.shape_cast %7 : vector<1x60x4xf32> to vector<60x4xf32>
    %c0_14 = arith.constant 0 : index
    %c4 = arith.constant 4 : index
    %9 = vector.load %arg13[%c0_14, %c4] : memref<60x20xf32, #tpu.memory_space<vmem>>, vector<60x4xf32>
    tpu.vector_store %arg13[%c0_14, %c4], %8 {strides = array<i32>} : memref<60x20xf32, #tpu.memory_space<vmem>>, vector<60x4xf32>,
    %c0_15 = arith.constant 0 : index
    %c2 = arith.constant 2 : index
    %c0_16 = arith.constant 0 : index
    %10 = vector.load %arg1[%c0_15, %c2, %c0_16] : memref<2x64x4xf32, #tpu.memory_space<vmem>>, vector<1x60x4xf32>
    %11 = vector.shape_cast %10 : vector<1x60x4xf32> to vector<60x4xf32>
    %c0_17 = arith.constant 0 : index
    %c8 = arith.constant 8 : index
    %12 = vector.load %arg13[%c0_17, %c8] : memref<60x20xf32, #tpu.memory_space<vmem>>, vector<60x4xf32>
    tpu.vector_store %arg13[%c0_17, %c8], %11 {strides = array<i32>} : memref<60x20xf32, #tpu.memory_space<vmem>>, vector<60x4xf32>,
    %c0_18 = arith.constant 0 : index
    %c3 = arith.constant 3 : index
    %c0_19 = arith.constant 0 : index
    %13 = vector.load %arg1[%c0_18, %c3, %c0_19] : memref<2x64x4xf32, #tpu.memory_space<vmem>>, vector<1x60x4xf32>
    %14 = vector.shape_cast %13 : vector<1x60x4xf32> to vector<60x4xf32>
    %c0_20 = arith.constant 0 : index
    %c12 = arith.constant 12 : index
    %15 = vector.load %arg13[%c0_20, %c12] : memref<60x20xf32, #tpu.memory_space<vmem>>, vector<60x4xf32>
    tpu.vector_store %arg13[%c0_20, %c12], %14 {strides = array<i32>} : memref<60x20xf32, #tpu.memory_space<vmem>>, vector<60x4xf32>,
    %c0_21 = arith.constant 0 : index
    %c4_22 = arith.constant 4 : index
    %c0_23 = arith.constant 0 : index
    %16 = vector.load %arg1[%c0_21, %c4_22, %c0_23] : memref<2x64x4xf32, #tpu.memory_space<vmem>>, vector<1x60x4xf32>
    %17 = vector.shape_cast %16 : vector<1x60x4xf32> to vector<60x4xf32>
    %c0_24 = arith.constant 0 : index
    %c16 = arith.constant 16 : index
    %18 = vector.load %arg13[%c0_24, %c16] : memref<60x20xf32, #tpu.memory_space<vmem>>, vector<60x4xf32>
    tpu.vector_store %arg13[%c0_24, %c16], %17 {strides = array<i32>} : memref<60x20xf32, #tpu.memory_space<vmem>>, vector<60x4xf32>,
    %c0_25 = arith.constant 0 : index
    %c0_26 = arith.constant 0 : index
    %19 = vector.load %arg13[%c0_25, %c0_26] : memref<60x20xf32, #tpu.memory_space<vmem>>, vector<60x20xf32>
    %cst = arith.constant dense<0.000000e+00> : vector<60x8xf32>
    %20 = tpu.matmul %19, %0, %cst {dimension_numbers = #tpu.dot_dimension_numbers<[1], [0], [0], [1], [0, 0, 1, 1], [], []>} : vector<60x20xf32>, vector<20x8xf32>, vector<60x8xf32> -> vector<60x8xf32>
    %21 = vector.broadcast %1 : vector<1x8xf32> to vector<60x8xf32>
    %22 = arith.addf %20, %21 : vector<60x8xf32>
    %cst_27 = arith.constant 0.000000e+00 : f32
    %23 = vector.broadcast %cst_27 : f32 to vector<60x8xf32>
    %24 = arith.maximumf %22, %23 : vector<60x8xf32>
    %c0_28 = arith.constant 0 : index
    %c0_29 = arith.constant 0 : index
    %25 = vector.load %arg14[%c0_28, %c0_29] : memref<60x8xf32, #tpu.memory_space<vmem>>, vector<60x8xf32>
    tpu.vector_store %arg14[%c0_28, %c0_29], %24 {strides = array<i32>} : memref<60x8xf32, #tpu.memory_space<vmem>>, vector<60x8xf32>,
    %c0_30 = arith.constant 0 : index
    %c0_31 = arith.constant 0 : index
    %26 = tpu.strided_load %arg14[%c0_30, %c0_31] {strides = array<i32: 2, 1>} : memref<60x8xf32, #tpu.memory_space<vmem>>, vector<30x8xf32>
    %c1_32 = arith.constant 1 : index
    %c0_33 = arith.constant 0 : index
    %27 = tpu.strided_load %arg14[%c1_32, %c0_33] {strides = array<i32: 2, 1>} : memref<60x8xf32, #tpu.memory_space<vmem>>, vector<30x8xf32>
    %28 = arith.maximumf %26, %27 : vector<30x8xf32>
    %c0_34 = arith.constant 0 : index
    %c0_35 = arith.constant 0 : index
    %29 = vector.load %arg15[%c0_34, %c0_35] : memref<30x8xf32, #tpu.memory_space<vmem>>, vector<30x8xf32>
    tpu.vector_store %arg15[%c0_34, %c0_35], %28 {strides = array<i32>} : memref<30x8xf32, #tpu.memory_space<vmem>>, vector<30x8xf32>,
    %c0_36 = arith.constant 0 : index
    %c0_37 = arith.constant 0 : index
    %30 = vector.load %arg15[%c0_36, %c0_37] : memref<30x8xf32, #tpu.memory_space<vmem>>, vector<28x8xf32>
    %c0_38 = arith.constant 0 : index
    %c0_39 = arith.constant 0 : index
    %31 = vector.load %arg16[%c0_38, %c0_39] : memref<28x24xf32, #tpu.memory_space<vmem>>, vector<28x8xf32>
    tpu.vector_store %arg16[%c0_38, %c0_39], %30 {strides = array<i32>} : memref<28x24xf32, #tpu.memory_space<vmem>>, vector<28x8xf32>,
    %c1_40 = arith.constant 1 : index
    %c0_41 = arith.constant 0 : index
    %32 = vector.load %arg15[%c1_40, %c0_41] : memref<30x8xf32, #tpu.memory_space<vmem>>, vector<28x8xf32>
    %c0_42 = arith.constant 0 : index
    %c8_43 = arith.constant 8 : index
    %33 = vector.load %arg16[%c0_42, %c8_43] : memref<28x24xf32, #tpu.memory_space<vmem>>, vector<28x8xf32>
    tpu.vector_store %arg16[%c0_42, %c8_43], %32 {strides = array<i32>} : memref<28x24xf32, #tpu.memory_space<vmem>>, vector<28x8xf32>,
    %c2_44 = arith.constant 2 : index
    %c0_45 = arith.constant 0 : index
    %34 = vector.load %arg15[%c2_44, %c0_45] : memref<30x8xf32, #tpu.memory_space<vmem>>, vector<28x8xf32>
    %c0_46 = arith.constant 0 : index
    %c16_47 = arith.constant 16 : index
    %35 = vector.load %arg16[%c0_46, %c16_47] : memref<28x24xf32, #tpu.memory_space<vmem>>, vector<28x8xf32>
    tpu.vector_store %arg16[%c0_46, %c16_47], %34 {strides = array<i32>} : memref<28x24xf32, #tpu.memory_space<vmem>>, vector<28x8xf32>,
    %c0_48 = arith.constant 0 : index
    %c0_49 = arith.constant 0 : index
    %36 = vector.load %arg16[%c0_48, %c0_49] : memref<28x24xf32, #tpu.memory_space<vmem>>, vector<28x24xf32>
    %cst_50 = arith.constant dense<0.000000e+00> : vector<28x16xf32>
    %37 = tpu.matmul %36, %2, %cst_50 {dimension_numbers = #tpu.dot_dimension_numbers<[1], [0], [0], [1], [0, 0, 1, 1], [], []>} : vector<28x24xf32>, vector<24x16xf32>, vector<28x16xf32> -> vector<28x16xf32>
    %38 = vector.broadcast %3 : vector<1x16xf32> to vector<28x16xf32>
    %39 = arith.addf %37, %38 : vector<28x16xf32>
    %cst_51 = arith.constant 0.000000e+00 : f32
    %40 = vector.broadcast %cst_51 : f32 to vector<28x16xf32>
    %41 = arith.maximumf %39, %40 : vector<28x16xf32>
    %c0_52 = arith.constant 0 : index
    %c0_53 = arith.constant 0 : index
    %42 = vector.load %arg17[%c0_52, %c0_53] : memref<56x16xf32, #tpu.memory_space<vmem>>, vector<28x16xf32>
    tpu.vector_store %arg17[%c0_52, %c0_53], %41 {strides = array<i32>} : memref<56x16xf32, #tpu.memory_space<vmem>>, vector<28x16xf32>,
    %c1_54 = arith.constant 1 : index
    %c0_55 = arith.constant 0 : index
    %c0_56 = arith.constant 0 : index
    %43 = vector.load %arg1[%c1_54, %c0_55, %c0_56] : memref<2x64x4xf32, #tpu.memory_space<vmem>>, vector<1x60x4xf32>
    %44 = vector.shape_cast %43 : vector<1x60x4xf32> to vector<60x4xf32>
    %c0_57 = arith.constant 0 : index
    %c0_58 = arith.constant 0 : index
    %45 = vector.load %arg13[%c0_57, %c0_58] : memref<60x20xf32, #tpu.memory_space<vmem>>, vector<60x4xf32>
    tpu.vector_store %arg13[%c0_57, %c0_58], %44 {strides = array<i32>} : memref<60x20xf32, #tpu.memory_space<vmem>>, vector<60x4xf32>,
    %c1_59 = arith.constant 1 : index
    %c1_60 = arith.constant 1 : index
    %c0_61 = arith.constant 0 : index
    %46 = vector.load %arg1[%c1_59, %c1_60, %c0_61] : memref<2x64x4xf32, #tpu.memory_space<vmem>>, vector<1x60x4xf32>
    %47 = vector.shape_cast %46 : vector<1x60x4xf32> to vector<60x4xf32>
    %c0_62 = arith.constant 0 : index
    %c4_63 = arith.constant 4 : index
    %48 = vector.load %arg13[%c0_62, %c4_63] : memref<60x20xf32, #tpu.memory_space<vmem>>, vector<60x4xf32>
    tpu.vector_store %arg13[%c0_62, %c4_63], %47 {strides = array<i32>} : memref<60x20xf32, #tpu.memory_space<vmem>>, vector<60x4xf32>,
    %c1_64 = arith.constant 1 : index
    %c2_65 = arith.constant 2 : index
    %c0_66 = arith.constant 0 : index
    %49 = vector.load %arg1[%c1_64, %c2_65, %c0_66] : memref<2x64x4xf32, #tpu.memory_space<vmem>>, vector<1x60x4xf32>
    %50 = vector.shape_cast %49 : vector<1x60x4xf32> to vector<60x4xf32>
    %c0_67 = arith.constant 0 : index
    %c8_68 = arith.constant 8 : index
    %51 = vector.load %arg13[%c0_67, %c8_68] : memref<60x20xf32, #tpu.memory_space<vmem>>, vector<60x4xf32>
    tpu.vector_store %arg13[%c0_67, %c8_68], %50 {strides = array<i32>} : memref<60x20xf32, #tpu.memory_space<vmem>>, vector<60x4xf32>,
    %c1_69 = arith.constant 1 : index
    %c3_70 = arith.constant 3 : index
    %c0_71 = arith.constant 0 : index
    %52 = vector.load %arg1[%c1_69, %c3_70, %c0_71] : memref<2x64x4xf32, #tpu.memory_space<vmem>>, vector<1x60x4xf32>
    %53 = vector.shape_cast %52 : vector<1x60x4xf32> to vector<60x4xf32>
    %c0_72 = arith.constant 0 : index
    %c12_73 = arith.constant 12 : index
    %54 = vector.load %arg13[%c0_72, %c12_73] : memref<60x20xf32, #tpu.memory_space<vmem>>, vector<60x4xf32>
    tpu.vector_store %arg13[%c0_72, %c12_73], %53 {strides = array<i32>} : memref<60x20xf32, #tpu.memory_space<vmem>>, vector<60x4xf32>,
    %c1_74 = arith.constant 1 : index
    %c4_75 = arith.constant 4 : index
    %c0_76 = arith.constant 0 : index
    %55 = vector.load %arg1[%c1_74, %c4_75, %c0_76] : memref<2x64x4xf32, #tpu.memory_space<vmem>>, vector<1x60x4xf32>
    %56 = vector.shape_cast %55 : vector<1x60x4xf32> to vector<60x4xf32>
    %c0_77 = arith.constant 0 : index
    %c16_78 = arith.constant 16 : index
    %57 = vector.load %arg13[%c0_77, %c16_78] : memref<60x20xf32, #tpu.memory_space<vmem>>, vector<60x4xf32>
    tpu.vector_store %arg13[%c0_77, %c16_78], %56 {strides = array<i32>} : memref<60x20xf32, #tpu.memory_space<vmem>>, vector<60x4xf32>,
    %c0_79 = arith.constant 0 : index
    %c0_80 = arith.constant 0 : index
    %58 = vector.load %arg13[%c0_79, %c0_80] : memref<60x20xf32, #tpu.memory_space<vmem>>, vector<60x20xf32>
    %cst_81 = arith.constant dense<0.000000e+00> : vector<60x8xf32>
    %59 = tpu.matmul %58, %0, %cst_81 {dimension_numbers = #tpu.dot_dimension_numbers<[1], [0], [0], [1], [0, 0, 1, 1], [], []>} : vector<60x20xf32>, vector<20x8xf32>, vector<60x8xf32> -> vector<60x8xf32>
    %60 = vector.broadcast %1 : vector<1x8xf32> to vector<60x8xf32>
    %61 = arith.addf %59, %60 : vector<60x8xf32>
    %cst_82 = arith.constant 0.000000e+00 : f32
    %62 = vector.broadcast %cst_82 : f32 to vector<60x8xf32>
    %63 = arith.maximumf %61, %62 : vector<60x8xf32>
    %c0_83 = arith.constant 0 : index
    %c0_84 = arith.constant 0 : index
    %64 = vector.load %arg14[%c0_83, %c0_84] : memref<60x8xf32, #tpu.memory_space<vmem>>, vector<60x8xf32>
    tpu.vector_store %arg14[%c0_83, %c0_84], %63 {strides = array<i32>} : memref<60x8xf32, #tpu.memory_space<vmem>>, vector<60x8xf32>,
    %c0_85 = arith.constant 0 : index
    %c0_86 = arith.constant 0 : index
    %65 = tpu.strided_load %arg14[%c0_85, %c0_86] {strides = array<i32: 2, 1>} : memref<60x8xf32, #tpu.memory_space<vmem>>, vector<30x8xf32>
    %c1_87 = arith.constant 1 : index
    %c0_88 = arith.constant 0 : index
    %66 = tpu.strided_load %arg14[%c1_87, %c0_88] {strides = array<i32: 2, 1>} : memref<60x8xf32, #tpu.memory_space<vmem>>, vector<30x8xf32>
    %67 = arith.maximumf %65, %66 : vector<30x8xf32>
    %c0_89 = arith.constant 0 : index
    %c0_90 = arith.constant 0 : index
    %68 = vector.load %arg15[%c0_89, %c0_90] : memref<30x8xf32, #tpu.memory_space<vmem>>, vector<30x8xf32>
    tpu.vector_store %arg15[%c0_89, %c0_90], %67 {strides = array<i32>} : memref<30x8xf32, #tpu.memory_space<vmem>>, vector<30x8xf32>,
    %c0_91 = arith.constant 0 : index
    %c0_92 = arith.constant 0 : index
    %69 = vector.load %arg15[%c0_91, %c0_92] : memref<30x8xf32, #tpu.memory_space<vmem>>, vector<28x8xf32>
    %c0_93 = arith.constant 0 : index
    %c0_94 = arith.constant 0 : index
    %70 = vector.load %arg16[%c0_93, %c0_94] : memref<28x24xf32, #tpu.memory_space<vmem>>, vector<28x8xf32>
    tpu.vector_store %arg16[%c0_93, %c0_94], %69 {strides = array<i32>} : memref<28x24xf32, #tpu.memory_space<vmem>>, vector<28x8xf32>,
    %c1_95 = arith.constant 1 : index
    %c0_96 = arith.constant 0 : index
    %71 = vector.load %arg15[%c1_95, %c0_96] : memref<30x8xf32, #tpu.memory_space<vmem>>, vector<28x8xf32>
    %c0_97 = arith.constant 0 : index
    %c8_98 = arith.constant 8 : index
    %72 = vector.load %arg16[%c0_97, %c8_98] : memref<28x24xf32, #tpu.memory_space<vmem>>, vector<28x8xf32>
    tpu.vector_store %arg16[%c0_97, %c8_98], %71 {strides = array<i32>} : memref<28x24xf32, #tpu.memory_space<vmem>>, vector<28x8xf32>,
    %c2_99 = arith.constant 2 : index
    %c0_100 = arith.constant 0 : index
    %73 = vector.load %arg15[%c2_99, %c0_100] : memref<30x8xf32, #tpu.memory_space<vmem>>, vector<28x8xf32>
    %c0_101 = arith.constant 0 : index
    %c16_102 = arith.constant 16 : index
    %74 = vector.load %arg16[%c0_101, %c16_102] : memref<28x24xf32, #tpu.memory_space<vmem>>, vector<28x8xf32>
    tpu.vector_store %arg16[%c0_101, %c16_102], %73 {strides = array<i32>} : memref<28x24xf32, #tpu.memory_space<vmem>>, vector<28x8xf32>,
    %c0_103 = arith.constant 0 : index
    %c0_104 = arith.constant 0 : index
    %75 = vector.load %arg16[%c0_103, %c0_104] : memref<28x24xf32, #tpu.memory_space<vmem>>, vector<28x24xf32>
    %cst_105 = arith.constant dense<0.000000e+00> : vector<28x16xf32>
    %76 = tpu.matmul %75, %2, %cst_105 {dimension_numbers = #tpu.dot_dimension_numbers<[1], [0], [0], [1], [0, 0, 1, 1], [], []>} : vector<28x24xf32>, vector<24x16xf32>, vector<28x16xf32> -> vector<28x16xf32>
    %77 = vector.broadcast %3 : vector<1x16xf32> to vector<28x16xf32>
    %78 = arith.addf %76, %77 : vector<28x16xf32>
    %cst_106 = arith.constant 0.000000e+00 : f32
    %79 = vector.broadcast %cst_106 : f32 to vector<28x16xf32>
    %80 = arith.maximumf %78, %79 : vector<28x16xf32>
    %c28 = arith.constant 28 : index
    %c0_107 = arith.constant 0 : index
    %81 = vector.load %arg17[%c28, %c0_107] : memref<56x16xf32, #tpu.memory_space<vmem>>, vector<28x16xf32>
    tpu.vector_store %arg17[%c28, %c0_107], %80 {strides = array<i32>} : memref<56x16xf32, #tpu.memory_space<vmem>>, vector<28x16xf32>,
    %c0_108 = arith.constant 0 : index
    %c0_109 = arith.constant 0 : index
    %82 = tpu.strided_load %arg17[%c0_108, %c0_109] {strides = array<i32: 28, 1>} : memref<56x16xf32, #tpu.memory_space<vmem>>, vector<2x16xf32>
    %c1_110 = arith.constant 1 : index
    %c0_111 = arith.constant 0 : index
    %83 = tpu.strided_load %arg17[%c1_110, %c0_111] {strides = array<i32: 28, 1>} : memref<56x16xf32, #tpu.memory_space<vmem>>, vector<2x16xf32>
    %84 = arith.maximumf %82, %83 : vector<2x16xf32>
    %c0_112 = arith.constant 0 : index
    %c0_113 = arith.constant 0 : index
    %85 = vector.load %arg18[%c0_112, %c0_113] : memref<2x224xf32, #tpu.memory_space<vmem>>, vector<2x16xf32>
    tpu.vector_store %arg18[%c0_112, %c0_113], %84 {strides = array<i32>} : memref<2x224xf32, #tpu.memory_space<vmem>>, vector<2x16xf32>,
    %c2_114 = arith.constant 2 : index
    %c0_115 = arith.constant 0 : index
    %86 = tpu.strided_load %arg17[%c2_114, %c0_115] {strides = array<i32: 28, 1>} : memref<56x16xf32, #tpu.memory_space<vmem>>, vector<2x16xf32>
    %c3_116 = arith.constant 3 : index
    %c0_117 = arith.constant 0 : index
    %87 = tpu.strided_load %arg17[%c3_116, %c0_117] {strides = array<i32: 28, 1>} : memref<56x16xf32, #tpu.memory_space<vmem>>, vector<2x16xf32>
    %88 = arith.maximumf %86, %87 : vector<2x16xf32>
    %c0_118 = arith.constant 0 : index
    %c16_119 = arith.constant 16 : index
    %89 = vector.load %arg18[%c0_118, %c16_119] : memref<2x224xf32, #tpu.memory_space<vmem>>, vector<2x16xf32>
    tpu.vector_store %arg18[%c0_118, %c16_119], %88 {strides = array<i32>} : memref<2x224xf32, #tpu.memory_space<vmem>>, vector<2x16xf32>,
    %c4_120 = arith.constant 4 : index
    %c0_121 = arith.constant 0 : index
    %90 = tpu.strided_load %arg17[%c4_120, %c0_121] {strides = array<i32: 28, 1>} : memref<56x16xf32, #tpu.memory_space<vmem>>, vector<2x16xf32>
    %c5 = arith.constant 5 : index
    %c0_122 = arith.constant 0 : index
    %91 = tpu.strided_load %arg17[%c5, %c0_122] {strides = array<i32: 28, 1>} : memref<56x16xf32, #tpu.memory_space<vmem>>, vector<2x16xf32>
    %92 = arith.maximumf %90, %91 : vector<2x16xf32>
    %c0_123 = arith.constant 0 : index
    %c32 = arith.constant 32 : index
    %93 = vector.load %arg18[%c0_123, %c32] : memref<2x224xf32, #tpu.memory_space<vmem>>, vector<2x16xf32>
    tpu.vector_store %arg18[%c0_123, %c32], %92 {strides = array<i32>} : memref<2x224xf32, #tpu.memory_space<vmem>>, vector<2x16xf32>,
    %c6 = arith.constant 6 : index
    %c0_124 = arith.constant 0 : index
    %94 = tpu.strided_load %arg17[%c6, %c0_124] {strides = array<i32: 28, 1>} : memref<56x16xf32, #tpu.memory_space<vmem>>, vector<2x16xf32>
    %c7 = arith.constant 7 : index
    %c0_125 = arith.constant 0 : index
    %95 = tpu.strided_load %arg17[%c7, %c0_125] {strides = array<i32: 28, 1>} : memref<56x16xf32, #tpu.memory_space<vmem>>, vector<2x16xf32>
    %96 = arith.maximumf %94, %95 : vector<2x16xf32>
    %c0_126 = arith.constant 0 : index
    %c48 = arith.constant 48 : index
    %97 = vector.load %arg18[%c0_126, %c48] : memref<2x224xf32, #tpu.memory_space<vmem>>, vector<2x16xf32>
    tpu.vector_store %arg18[%c0_126, %c48], %96 {strides = array<i32>} : memref<2x224xf32, #tpu.memory_space<vmem>>, vector<2x16xf32>,
    %c8_127 = arith.constant 8 : index
    %c0_128 = arith.constant 0 : index
    %98 = tpu.strided_load %arg17[%c8_127, %c0_128] {strides = array<i32: 28, 1>} : memref<56x16xf32, #tpu.memory_space<vmem>>, vector<2x16xf32>
    %c9 = arith.constant 9 : index
    %c0_129 = arith.constant 0 : index
    %99 = tpu.strided_load %arg17[%c9, %c0_129] {strides = array<i32: 28, 1>} : memref<56x16xf32, #tpu.memory_space<vmem>>, vector<2x16xf32>
    %100 = arith.maximumf %98, %99 : vector<2x16xf32>
    %c0_130 = arith.constant 0 : index
    %c64 = arith.constant 64 : index
    %101 = vector.load %arg18[%c0_130, %c64] : memref<2x224xf32, #tpu.memory_space<vmem>>, vector<2x16xf32>
    tpu.vector_store %arg18[%c0_130, %c64], %100 {strides = array<i32>} : memref<2x224xf32, #tpu.memory_space<vmem>>, vector<2x16xf32>,
    %c10 = arith.constant 10 : index
    %c0_131 = arith.constant 0 : index
    %102 = tpu.strided_load %arg17[%c10, %c0_131] {strides = array<i32: 28, 1>} : memref<56x16xf32, #tpu.memory_space<vmem>>, vector<2x16xf32>
    %c11 = arith.constant 11 : index
    %c0_132 = arith.constant 0 : index
    %103 = tpu.strided_load %arg17[%c11, %c0_132] {strides = array<i32: 28, 1>} : memref<56x16xf32, #tpu.memory_space<vmem>>, vector<2x16xf32>
    %104 = arith.maximumf %102, %103 : vector<2x16xf32>
    %c0_133 = arith.constant 0 : index
    %c80 = arith.constant 80 : index
    %105 = vector.load %arg18[%c0_133, %c80] : memref<2x224xf32, #tpu.memory_space<vmem>>, vector<2x16xf32>
    tpu.vector_store %arg18[%c0_133, %c80], %104 {strides = array<i32>} : memref<2x224xf32, #tpu.memory_space<vmem>>, vector<2x16xf32>,
    %c12_134 = arith.constant 12 : index
    %c0_135 = arith.constant 0 : index
    %106 = tpu.strided_load %arg17[%c12_134, %c0_135] {strides = array<i32: 28, 1>} : memref<56x16xf32, #tpu.memory_space<vmem>>, vector<2x16xf32>
    %c13 = arith.constant 13 : index
    %c0_136 = arith.constant 0 : index
    %107 = tpu.strided_load %arg17[%c13, %c0_136] {strides = array<i32: 28, 1>} : memref<56x16xf32, #tpu.memory_space<vmem>>, vector<2x16xf32>
    %108 = arith.maximumf %106, %107 : vector<2x16xf32>
    %c0_137 = arith.constant 0 : index
    %c96 = arith.constant 96 : index
    %109 = vector.load %arg18[%c0_137, %c96] : memref<2x224xf32, #tpu.memory_space<vmem>>, vector<2x16xf32>
    tpu.vector_store %arg18[%c0_137, %c96], %108 {strides = array<i32>} : memref<2x224xf32, #tpu.memory_space<vmem>>, vector<2x16xf32>,
    %c14 = arith.constant 14 : index
    %c0_138 = arith.constant 0 : index
    %110 = tpu.strided_load %arg17[%c14, %c0_138] {strides = array<i32: 28, 1>} : memref<56x16xf32, #tpu.memory_space<vmem>>, vector<2x16xf32>
    %c15 = arith.constant 15 : index
    %c0_139 = arith.constant 0 : index
    %111 = tpu.strided_load %arg17[%c15, %c0_139] {strides = array<i32: 28, 1>} : memref<56x16xf32, #tpu.memory_space<vmem>>, vector<2x16xf32>
    %112 = arith.maximumf %110, %111 : vector<2x16xf32>
    %c0_140 = arith.constant 0 : index
    %c112 = arith.constant 112 : index
    %113 = vector.load %arg18[%c0_140, %c112] : memref<2x224xf32, #tpu.memory_space<vmem>>, vector<2x16xf32>
    tpu.vector_store %arg18[%c0_140, %c112], %112 {strides = array<i32>} : memref<2x224xf32, #tpu.memory_space<vmem>>, vector<2x16xf32>,
    %c16_141 = arith.constant 16 : index
    %c0_142 = arith.constant 0 : index
    %114 = tpu.strided_load %arg17[%c16_141, %c0_142] {strides = array<i32: 28, 1>} : memref<56x16xf32, #tpu.memory_space<vmem>>, vector<2x16xf32>
    %c17 = arith.constant 17 : index
    %c0_143 = arith.constant 0 : index
    %115 = tpu.strided_load %arg17[%c17, %c0_143] {strides = array<i32: 28, 1>} : memref<56x16xf32, #tpu.memory_space<vmem>>, vector<2x16xf32>
    %116 = arith.maximumf %114, %115 : vector<2x16xf32>
    %c0_144 = arith.constant 0 : index
    %c128 = arith.constant 128 : index
    %117 = vector.load %arg18[%c0_144, %c128] : memref<2x224xf32, #tpu.memory_space<vmem>>, vector<2x16xf32>
    tpu.vector_store %arg18[%c0_144, %c128], %116 {strides = array<i32>} : memref<2x224xf32, #tpu.memory_space<vmem>>, vector<2x16xf32>,
    %c18 = arith.constant 18 : index
    %c0_145 = arith.constant 0 : index
    %118 = tpu.strided_load %arg17[%c18, %c0_145] {strides = array<i32: 28, 1>} : memref<56x16xf32, #tpu.memory_space<vmem>>, vector<2x16xf32>
    %c19 = arith.constant 19 : index
    %c0_146 = arith.constant 0 : index
    %119 = tpu.strided_load %arg17[%c19, %c0_146] {strides = array<i32: 28, 1>} : memref<56x16xf32, #tpu.memory_space<vmem>>, vector<2x16xf32>
    %120 = arith.maximumf %118, %119 : vector<2x16xf32>
    %c0_147 = arith.constant 0 : index
    %c144 = arith.constant 144 : index
    %121 = vector.load %arg18[%c0_147, %c144] : memref<2x224xf32, #tpu.memory_space<vmem>>, vector<2x16xf32>
    tpu.vector_store %arg18[%c0_147, %c144], %120 {strides = array<i32>} : memref<2x224xf32, #tpu.memory_space<vmem>>, vector<2x16xf32>,
    %c20 = arith.constant 20 : index
    %c0_148 = arith.constant 0 : index
    %122 = tpu.strided_load %arg17[%c20, %c0_148] {strides = array<i32: 28, 1>} : memref<56x16xf32, #tpu.memory_space<vmem>>, vector<2x16xf32>
    %c21 = arith.constant 21 : index
    %c0_149 = arith.constant 0 : index
    %123 = tpu.strided_load %arg17[%c21, %c0_149] {strides = array<i32: 28, 1>} : memref<56x16xf32, #tpu.memory_space<vmem>>, vector<2x16xf32>
    %124 = arith.maximumf %122, %123 : vector<2x16xf32>
    %c0_150 = arith.constant 0 : index
    %c160 = arith.constant 160 : index
    %125 = vector.load %arg18[%c0_150, %c160] : memref<2x224xf32, #tpu.memory_space<vmem>>, vector<2x16xf32>
    tpu.vector_store %arg18[%c0_150, %c160], %124 {strides = array<i32>} : memref<2x224xf32, #tpu.memory_space<vmem>>, vector<2x16xf32>,
    %c22 = arith.constant 22 : index
    %c0_151 = arith.constant 0 : index
    %126 = tpu.strided_load %arg17[%c22, %c0_151] {strides = array<i32: 28, 1>} : memref<56x16xf32, #tpu.memory_space<vmem>>, vector<2x16xf32>
    %c23 = arith.constant 23 : index
    %c0_152 = arith.constant 0 : index
    %127 = tpu.strided_load %arg17[%c23, %c0_152] {strides = array<i32: 28, 1>} : memref<56x16xf32, #tpu.memory_space<vmem>>, vector<2x16xf32>
    %128 = arith.maximumf %126, %127 : vector<2x16xf32>
    %c0_153 = arith.constant 0 : index
    %c176 = arith.constant 176 : index
    %129 = vector.load %arg18[%c0_153, %c176] : memref<2x224xf32, #tpu.memory_space<vmem>>, vector<2x16xf32>
    tpu.vector_store %arg18[%c0_153, %c176], %128 {strides = array<i32>} : memref<2x224xf32, #tpu.memory_space<vmem>>, vector<2x16xf32>,
    %c24 = arith.constant 24 : index
    %c0_154 = arith.constant 0 : index
    %130 = tpu.strided_load %arg17[%c24, %c0_154] {strides = array<i32: 28, 1>} : memref<56x16xf32, #tpu.memory_space<vmem>>, vector<2x16xf32>
    %c25 = arith.constant 25 : index
    %c0_155 = arith.constant 0 : index
    %131 = tpu.strided_load %arg17[%c25, %c0_155] {strides = array<i32: 28, 1>} : memref<56x16xf32, #tpu.memory_space<vmem>>, vector<2x16xf32>
    %132 = arith.maximumf %130, %131 : vector<2x16xf32>
    %c0_156 = arith.constant 0 : index
    %c192 = arith.constant 192 : index
    %133 = vector.load %arg18[%c0_156, %c192] : memref<2x224xf32, #tpu.memory_space<vmem>>, vector<2x16xf32>
    tpu.vector_store %arg18[%c0_156, %c192], %132 {strides = array<i32>} : memref<2x224xf32, #tpu.memory_space<vmem>>, vector<2x16xf32>,
    %c26 = arith.constant 26 : index
    %c0_157 = arith.constant 0 : index
    %134 = tpu.strided_load %arg17[%c26, %c0_157] {strides = array<i32: 28, 1>} : memref<56x16xf32, #tpu.memory_space<vmem>>, vector<2x16xf32>
    %c27 = arith.constant 27 : index
    %c0_158 = arith.constant 0 : index
    %135 = tpu.strided_load %arg17[%c27, %c0_158] {strides = array<i32: 28, 1>} : memref<56x16xf32, #tpu.memory_space<vmem>>, vector<2x16xf32>
    %136 = arith.maximumf %134, %135 : vector<2x16xf32>
    %c0_159 = arith.constant 0 : index
    %c208 = arith.constant 208 : index
    %137 = vector.load %arg18[%c0_159, %c208] : memref<2x224xf32, #tpu.memory_space<vmem>>, vector<2x16xf32>
    tpu.vector_store %arg18[%c0_159, %c208], %136 {strides = array<i32>} : memref<2x224xf32, #tpu.memory_space<vmem>>, vector<2x16xf32>,
    %c0_160 = arith.constant 0 : index
    %c0_161 = arith.constant 0 : index
    %138 = vector.load %arg18[%c0_160, %c0_161] : memref<2x224xf32, #tpu.memory_space<vmem>>, vector<2x224xf32>
    %c0_162 = arith.constant 0 : index
    %c0_163 = arith.constant 0 : index
    %139 = vector.load %arg6[%c0_162, %c0_163] : memref<224x32xf32, #tpu.memory_space<vmem>>, vector<224x32xf32>
    %cst_164 = arith.constant dense<0.000000e+00> : vector<2x32xf32>
    %140 = tpu.matmul %138, %139, %cst_164 {dimension_numbers = #tpu.dot_dimension_numbers<[1], [0], [0], [1], [0, 0, 1, 1], [], []>} : vector<2x224xf32>, vector<224x32xf32>, vector<2x32xf32> -> vector<2x32xf32>
    %c0_165 = arith.constant 0 : index
    %c0_166 = arith.constant 0 : index
    %141 = vector.load %arg7[%c0_165, %c0_166] : memref<1x32xf32, #tpu.memory_space<vmem>>, vector<1x32xf32>
    %142 = vector.broadcast %141 : vector<1x32xf32> to vector<2x32xf32>
    %143 = arith.addf %140, %142 : vector<2x32xf32>
    %144 = math.tanh %143 : vector<2x32xf32>
    %c0_167 = arith.constant 0 : index
    %c0_168 = arith.constant 0 : index
    %145 = vector.load %arg8[%c0_167, %c0_168] : memref<32x16xf32, #tpu.memory_space<vmem>>, vector<32x16xf32>
    %cst_169 = arith.constant dense<0.000000e+00> : vector<2x16xf32>
    %146 = tpu.matmul %144, %145, %cst_169 {dimension_numbers = #tpu.dot_dimension_numbers<[1], [0], [0], [1], [0, 0, 1, 1], [], []>} : vector<2x32xf32>, vector<32x16xf32>, vector<2x16xf32> -> vector<2x16xf32>
    %c0_170 = arith.constant 0 : index
    %c0_171 = arith.constant 0 : index
    %147 = vector.load %arg9[%c0_170, %c0_171] : memref<1x16xf32, #tpu.memory_space<vmem>>, vector<1x16xf32>
    %148 = vector.broadcast %147 : vector<1x16xf32> to vector<2x16xf32>
    %149 = arith.addf %146, %148 : vector<2x16xf32>
    %150 = math.tanh %149 : vector<2x16xf32>
    %c0_172 = arith.constant 0 : index
    %c0_173 = arith.constant 0 : index
    %151 = vector.load %arg10[%c0_172, %c0_173] : memref<16x24xf32, #tpu.memory_space<vmem>>, vector<16x24xf32>
    %cst_174 = arith.constant dense<0.000000e+00> : vector<2x24xf32>
    %152 = tpu.matmul %150, %151, %cst_174 {dimension_numbers = #tpu.dot_dimension_numbers<[1], [0], [0], [1], [0, 0, 1, 1], [], []>} : vector<2x16xf32>, vector<16x24xf32>, vector<2x24xf32> -> vector<2x24xf32>
    %c0_175 = arith.constant 0 : index
    %c0_176 = arith.constant 0 : index
    %153 = vector.load %arg11[%c0_175, %c0_176] : memref<1x24xf32, #tpu.memory_space<vmem>>, vector<1x24xf32>
    %154 = vector.broadcast %153 : vector<1x24xf32> to vector<2x24xf32>
    %155 = arith.addf %152, %154 : vector<2x24xf32>
    %c0_177 = arith.constant 0 : index
    %c0_178 = arith.constant 0 : index
    %156 = vector.load %arg12[%c0_177, %c0_178] : memref<2x24xf32, #tpu.memory_space<vmem>>, vector<2x24xf32>
    tpu.vector_store %arg12[%c0_177, %c0_178], %155 {strides = array<i32>} : memref<2x24xf32, #tpu.memory_space<vmem>>, vector<2x24xf32>,
    return
  }
  func.func @transform_0(%arg0: i32) -> (i32, i32, i32) {
    %c0_i32 = arith.constant 0 : i32
    %c0_i32_0 = arith.constant 0 : i32
    %c0_i32_1 = arith.constant 0 : i32
    return %arg0, %c0_i32, %c0_i32_0 : i32, i32, i32
  }
  func.func @transform_1(%arg0: i32) -> (i32, i32) {
    %c0_i32 = arith.constant 0 : i32
    %c0_i32_0 = arith.constant 0 : i32
    %c0_i32_1 = arith.constant 0 : i32
    return %c0_i32, %c0_i32_0 : i32, i32
  }
  func.func @transform_2(%arg0: i32) -> (i32, i32) {
    %c0_i32 = arith.constant 0 : i32
    %c0_i32_0 = arith.constant 0 : i32
    %c0_i32_1 = arith.constant 0 : i32
    return %c0_i32, %c0_i32_0 : i32, i32
  }
  func.func @transform_3(%arg0: i32) -> (i32, i32) {
    %c0_i32 = arith.constant 0 : i32
    %c0_i32_0 = arith.constant 0 : i32
    %c0_i32_1 = arith.constant 0 : i32
    return %c0_i32, %c0_i32_0 : i32, i32
  }
  func.func @transform_4(%arg0: i32) -> (i32, i32) {
    %c0_i32 = arith.constant 0 : i32
    %c0_i32_0 = arith.constant 0 : i32
    %c0_i32_1 = arith.constant 0 : i32
    return %c0_i32, %c0_i32_0 : i32, i32
  }
  func.func @transform_5(%arg0: i32) -> (i32, i32) {
    %c0_i32 = arith.constant 0 : i32
    %c0_i32_0 = arith.constant 0 : i32
    %c0_i32_1 = arith.constant 0 : i32
    return %c0_i32, %c0_i32_0 : i32, i32
  }
  func.func @transform_6(%arg0: i32) -> (i32, i32) {
    %c0_i32 = arith.constant 0 : i32
    %c0_i32_0 = arith.constant 0 : i32
    %c0_i32_1 = arith.constant 0 : i32
    return %c0_i32, %c0_i32_0 : i32, i32
  }
  func.func @transform_7(%arg0: i32) -> (i32, i32) {
    %c0_i32 = arith.constant 0 : i32
    %c0_i32_0 = arith.constant 0 : i32
    %c0_i32_1 = arith.constant 0 : i32
    return %c0_i32, %c0_i32_0 : i32, i32
  }
  func.func @transform_8(%arg0: i32) -> (i32, i32) {
    %c0_i32 = arith.constant 0 : i32
    %c0_i32_0 = arith.constant 0 : i32
    %c0_i32_1 = arith.constant 0 : i32
    return %c0_i32, %c0_i32_0 : i32, i32
  }
  func.func @transform_9(%arg0: i32) -> (i32, i32) {
    %c0_i32 = arith.constant 0 : i32
    %c0_i32_0 = arith.constant 0 : i32
    %c0_i32_1 = arith.constant 0 : i32
    return %c0_i32, %c0_i32_0 : i32, i32
  }
  func.func @transform_10(%arg0: i32) -> (i32, i32) {
    %c0_i32 = arith.constant 0 : i32
    %c0_i32_0 = arith.constant 0 : i32
    %c0_i32_1 = arith.constant 0 : i32
    return %c0_i32, %c0_i32_0 : i32, i32
  }
  func.func @transform_11(%arg0: i32) -> (i32, i32) {
    %c0_i32 = arith.constant 0 : i32
    %c0_i32_0 = arith.constant 0 : i32
    return %arg0, %c0_i32 : i32, i32
  }
}

</mosaic_0001>

<bundles_post_ra>
// kernel: _lambda_.1
= control target key start
LH: loop header
LB: loop body
LE: loop exit
PB: predicated region body
PF: predicated region fallthrough
CT: control target
= control target key end

     0   :  { %s1940_s21 = smov 4   ;;  %s1941_s22 = smov 8   ;;  %vm55_vm0 = vcmask 31744   ;;  %vm304_vm1 = vcmask 1043456   ;;  %s2761_s0 = inlined_call_operand.vmem [shape: f32[2,64,4], index: 0, kind: input, shape index: {}]   ;;  %s2762_s1 = inlined_call_operand.vmem [shape: f32[20,8], index: 1, kind: input, shape index: {}]   ;;  %s2763_s2 = inlined_call_operand.vmem [shape: f32[1,8], index: 2, kind: input, shape index: {}]   ;;  %s2764_s3 = inlined_call_operand.vmem [shape: f32[24,16], index: 3, kind: input, shape index: {}]   ;;  %s2765_s4 = inlined_call_operand.vmem [shape: f32[1,16], index: 4, kind: input, shape index: {}]   ;;  %s2766_s5 = inlined_call_operand.vmem [shape: f32[224,32], index: 5, kind: input, shape index: {}]   ;;  %s2767_s6 = inlined_call_operand.vmem [shape: f32[1,32], index: 6, kind: input, shape index: {}]   ;;  %s2768_s7 = inlined_call_operand.vmem [shape: f32[32,16], index: 7, kind: input, shape index: {}]   ;;  %s2769_s8 = inlined_call_operand.vmem [shape: f32[1,16], index: 8, kind: input, shape index: {}]   ;;  %s2770_s9 = inlined_call_operand.vmem [shape: f32[16,24], index: 9, kind: input, shape index: {}]   ;;  %s2771_s10 = inlined_call_operand.vmem [shape: f32[1,24], index: 10, kind: input, shape index: {}]   ;;  %s2772_s11 = inlined_call_operand.hbm [shape: f32[2,24], index: 11, kind: output, shape index: {}]  }
   0x1   :  { %v65_v0 = vld [vmem:[%s2761_s0 + $0x1] sm:$0xff]  ;;  %v66_v2 = vld [vmem:[%s2761_s0 + $0x9] sm:$0xff]  ;;  %s1942_s12 = smov 12   ;;  %v67_v7 = vld [vmem:[%s2761_s0 + $0x11] sm:$0xff]  ;;  %s1943_s27 = smov 16  }
   0x2   :  { %v115_v1 = vld [vmem:[%s2761_s0 + $0x2] sm:$0xff]  ;;  %81 = vrot.lane.b32.xlu0 %v65_v0, %s1940_s21  ;;  %v116_v3 = vld [vmem:[%s2761_s0 + $0xa] sm:$0xff]  ;;  %v50_v11 = vld [vmem:[%s2761_s0 + $0x18] sm:$0xff] }
   0x3   :  { %131 = vrot.lane.b32.xlu1 %v115_v1, %s1941_s22  ;;  %v165_v4 = vld [vmem:[%s2761_s0 + $0x3] sm:$0xff]  ;;  %v166_v5 = vld [vmem:[%s2761_s0 + $0xb] sm:$0xff]  ;;  %59 = vst.msk [vmem:[#allocation2 + $0x18] sm:$0xff] %vm55_vm0, %v50_v11  ;;  %v68_v15 = vld [vmem:[%s2761_s0 + $0x19] sm:$0xff] }
   0x4   :  { %v215_v6 = vld [vmem:[%s2761_s0 + $0x4] sm:$0xff]  ;;  %v49_v10 = vld [vmem:[%s2761_s0 + $0x10] sm:$0xff] }
   0x5   :  { %v47_v8 = vld [vmem:[%s2761_s0] sm:$0xff]  ;;  %v48_v9 = vld [vmem:[%s2761_s0 + $0x8] sm:$0xff]  ;;  %58 = vst.msk [vmem:[#allocation2 + $0x10] sm:$0xff] %vm55_vm0, %v49_v10  ;;  %v2065_v12 = vld [vmem:[%s2762_s1 + $0x10] sm:$0xf] }
   0x6   :  { %83 = vrot.lane.b32.xlu0 %v66_v2, %s1940_s21  ;;  %56 = vst.msk [vmem:[#allocation2] sm:$0xff] %vm55_vm0, %v47_v8  ;;  %57 = vst.msk [vmem:[#allocation2 + $0x8] sm:$0xff] %vm55_vm0, %v48_v9  ;;  %v2070_v13 = vld [vmem:[%s2762_s1 + $0x8] sm:$0xff]  ;;  %1822 = vmatprep.subr.msk.mxu0 %vm304_vm1, %v2065_v12 }
   0x7   :  { %133 = vrot.lane.b32.xlu1 %v116_v3, %s1941_s22  ;;  %v216_v14 = vld [vmem:[%s2761_s0 + $0xc] sm:$0xff] }
   0xa   :  { %181 = vrot.lane.b32.xlu0 %v165_v4, %s1942_s12 }
   0xb   :  { %183 = vrot.lane.b32.xlu1 %v166_v5, %s1942_s12 }
   0xe   :  { %231 = vrot.lane.b32.xlu0 %v215_v6, %s1943_s27 }
   0xf   :  { %85 = vrot.lane.b32.xlu1 %v67_v7, %s1940_s21 }
  0x10   :  { %16 = vsyncpa [#allocation9], 0  ;;  %1823 = vmatpush3.msk.msra.mxu0 %vm304_vm1, %v2065_v12  ;;  %v51_v16 = vld [vmem:[%s2761_s0 + $0x20] sm:$0xff]  ;;  %v117_v18 = vld [vmem:[%s2761_s0 + $0x12] sm:$0xff]  ;;  %vm63_vm2 = vcmask 27648   ;;  %vm105_vm3 = vcmask 64544  }
  0x11   :  { %1824 = vmatprep.subr.mxu0 %v2070_v13  ;;  %v2089_v17 = vld [vmem:[%s2762_s1] sm:$0xff]  ;;  %60 = vst.msk [vmem:[#allocation2 + $0x20] sm:$0xff] %vm55_vm0, %v51_v16  ;;  %v52_v20 = vld [vmem:[%s2761_s0 + $0x28] sm:$0xff]  ;;  %v167_v21 = vld [vmem:[%s2761_s0 + $0x13] sm:$0xff]  ;;  %vm155_vm4 = vcmask 97344   ;;  %vm205_vm5 = vcmask 130144  }
  0x12   :  { %233 = vrot.lane.b32.xlu0 %v216_v14, %s1943_s27  ;;  %v118_v19 = vld [vmem:[%s2761_s0 + $0x1a] sm:$0xff]  ;;  %1825 = vmatpush3.msra.mxu0 %v2070_v13  ;;  %61 = vst.msk [vmem:[#allocation2 + $0x28] sm:$0xff] %vm55_vm0, %v52_v20  ;;  %v70_v26 = vld [vmem:[%s2761_s0 + $0x29] sm:$0xff]  ;;  %v71_v34 = vld [vmem:[%s2761_s0 + $0x31] sm:$0xff]  ;;  %vm255_vm6 = vcmask 162944   ;;  %vm279_vm7 = vcmask 162816  }
  0x13   :  { %87 = vrot.lane.b32.xlu1 %v68_v15, %s1940_s21  ;;  %1826 = vmatprep.subr.mxu0 %v2089_v17  ;;  %v168_v22 = vld [vmem:[%s2761_s0 + $0x1b] sm:$0xff]  ;;  %v53_v27 = vld [vmem:[%s2761_s0 + $0x30] sm:$0xff]  ;;  %v169_v31 = vld [vmem:[%s2761_s0 + $0x23] sm:$0xff]  ;;  %vm113_vm8 = vcmask 60448   ;;  %vm163_vm9 = vcmask 93248   ;;  %vm213_vm10 = vcmask 126048  }
  0x14   :  { %1827 = vmatpush3.msra.mxu0 %v2089_v17  ;;  %v217_v23 = vld [vmem:[%s2761_s0 + $0x14] sm:$0xff]  ;;  %v69_v24 = vld [vmem:[%s2761_s0 + $0x21] sm:$0xff]  ;;  %62 = vst.msk [vmem:[#allocation2 + $0x30] sm:$0xff] %vm55_vm0, %v53_v27  ;;  %v120_v29 = vld [vmem:[%s2761_s0 + $0x2a] sm:$0xff]  ;;  %vm263_vm11 = vcmask 158848   ;;  %vm421_vm12 = vcmask 64512  }
  0x15   :  { %v218_v25 = vld [vmem:[%s2761_s0 + $0x1c] sm:$0xff]  ;;  %v54_v30 = vld [vmem:[%s2761_s0 + $0x38] sm:$0xf]  ;;  %v170_v32 = vld [vmem:[%s2761_s0 + $0x2b] sm:$0xff]  ;;  %vm429_vm13 = vcmask 60416   ;;  %vm2773_vm14 = vcmask 62464  }
  0x16   :  { %135 = vrot.lane.b32.xlu0 %v117_v18, %s1941_s22  ;;  %v119_v28 = vld [vmem:[%s2761_s0 + $0x22] sm:$0xff]  ;;  %64 = vst.msk [vmem:[#allocation2 + $0x38] sm:$0xf] %vm63_vm2, %v54_v30  ;;  %v220_v35 = vld [vmem:[%s2761_s0 + $0x2c] sm:$0xff]  ;;  %v72_v36 = vld [vmem:[%s2761_s0 + $0x39] sm:$0xf] }
  0x17   :  { %137 = vrot.lane.b32.xlu1 %v118_v19, %s1941_s22  ;;  %v219_v33 = vld [vmem:[%s2761_s0 + $0x24] sm:$0xff]  ;;  %v121_v37 = vld [vmem:[%s2761_s0 + $0x32] sm:$0xff]  ;;  %v122_v38 = vld [vmem:[%s2761_s0 + $0x3a] sm:$0xf]  ;;  %vm483_vm15 = vcmask 130112   ;;  %s1946_s18 = smov 64  }
  0x18   :  { %v171_v39 = vld [vmem:[%s2761_s0 + $0x33] sm:$0xff]  ;;  %v172_v40 = vld [vmem:[%s2761_s0 + $0x3b] sm:$0xf]  ;;  %v1726_v43 = vld [vmem:[%s2761_s0 + $0x41] sm:$0xff]  ;;  %s1947_s19 = smov 32   ;;  %s1948_s20 = smov 80  }
  0x19   :  { %v221_v41 = vld [vmem:[%s2761_s0 + $0x34] sm:$0xff]  ;;  %v222_v42 = vld [vmem:[%s2761_s0 + $0x3c] sm:$0xf]  ;;  %v1734_v44 = vld [vmem:[%s2761_s0 + $0x42] sm:$0xff]  ;;  %s1949_s23 = smov 96   ;;  %s1950_s29 = smov 48  }
  0x1a   :  { %185 = vrot.lane.b32.xlu0 %v167_v21, %s1942_s12  ;;  %v1727_v27 = vld [vmem:[%s2761_s0 + $0x49] sm:$0xff]  ;;  %v1736_v30 = vld [vmem:[%s2761_s0 + $0x52] sm:$0xff] }
  0x1b   :  { %187 = vrot.lane.b32.xlu1 %v168_v22, %s1942_s12  ;;  %v1725_v22 = vld [vmem:[%s2761_s0 + $0x78] sm:$0xf] }
  0x1e   :  { %235 = vrot.lane.b32.xlu0 %v217_v23, %s1943_s27 }
  0x1f   :  { %89 = vrot.lane.b32.xlu1 %v69_v24, %s1940_s21 }
  0x22   :  { %237 = vrot.lane.b32.xlu0 %v218_v25, %s1943_s27  ;;  %v1742_v25 = vld [vmem:[%s2761_s0 + $0x43] sm:$0xff] }
  0x23   :  { %91 = vrot.lane.b32.xlu1 %v70_v26, %s1940_s21  ;;  %v1750_v26 = vld [vmem:[%s2761_s0 + $0x44] sm:$0xff] }
  0x26   :  { %139 = vrot.lane.b32.xlu0 %v119_v28, %s1941_s22  ;;  %v1751_v28 = vld [vmem:[%s2761_s0 + $0x4c] sm:$0xff] }
  0x27   :  { %141 = vrot.lane.b32.xlu1 %v120_v29, %s1941_s22  ;;  %v1735_v29 = vld [vmem:[%s2761_s0 + $0x4a] sm:$0xff] }
  0x2a   :  { %189 = vrot.lane.b32.xlu0 %v169_v31, %s1942_s12  ;;  %v1743_v31 = vld [vmem:[%s2761_s0 + $0x4b] sm:$0xff] }
  0x2b   :  { %191 = vrot.lane.b32.xlu1 %v170_v32, %s1942_s12  ;;  %v1744_v32 = vld [vmem:[%s2761_s0 + $0x53] sm:$0xff] }
  0x2e   :  { %239 = vrot.lane.b32.xlu0 %v219_v33, %s1943_s27  ;;  %v1728_v33 = vld [vmem:[%s2761_s0 + $0x51] sm:$0xff] }
  0x2f   :  { %93 = vrot.lane.b32.xlu1 %v71_v34, %s1940_s21  ;;  %v1752_v34 = vld [vmem:[%s2761_s0 + $0x54] sm:$0xff] }
  0x32   :  { %241 = vrot.lane.b32.xlu0 %v220_v35, %s1943_s27  ;;  %v1729_v35 = vld [vmem:[%s2761_s0 + $0x59] sm:$0xff] }
  0x33   :  { %95 = vrot.lane.b32.xlu1 %v72_v36, %s1940_s21  ;;  %v1753_v36 = vld [vmem:[%s2761_s0 + $0x5c] sm:$0xff] }
  0x36   :  { %143 = vrot.lane.b32.xlu0 %v121_v37, %s1941_s22  ;;  %v1737_v37 = vld [vmem:[%s2761_s0 + $0x5a] sm:$0xff] }
  0x37   :  { %145 = vrot.lane.b32.xlu1 %v122_v38, %s1941_s22  ;;  %v1738_v38 = vld [vmem:[%s2761_s0 + $0x62] sm:$0xff] }
  0x3a   :  { %193 = vrot.lane.b32.xlu0 %v171_v39, %s1942_s12  ;;  %v1745_v39 = vld [vmem:[%s2761_s0 + $0x5b] sm:$0xff] }
  0x3b   :  { %195 = vrot.lane.b32.xlu1 %v172_v40, %s1942_s12  ;;  %v1746_v40 = vld [vmem:[%s2761_s0 + $0x63] sm:$0xff] }
  0x3e   :  { %243 = vrot.lane.b32.xlu0 %v221_v41, %s1943_s27  ;;  %v1730_v41 = vld [vmem:[%s2761_s0 + $0x61] sm:$0xff] }
  0x3f   :  { %245 = vrot.lane.b32.xlu1 %v222_v42, %s1943_s27  ;;  %v1754_v42 = vld [vmem:[%s2761_s0 + $0x64] sm:$0xff] }
  0x42   :  { %666 = vrot.lane.b32.xlu0 %v1726_v43, %s1940_s21  ;;  %v1731_v43 = vld [vmem:[%s2761_s0 + $0x69] sm:$0xff] }
  0x43   :  { %668 = vrot.lane.b32.xlu1 %v1727_v27, %s1940_s21 }
  0x46   :  { %714 = vrot.lane.b32.xlu0 %v1734_v44, %s1941_s22  ;;  %v1739_v44 = vld [vmem:[%s2761_s0 + $0x6a] sm:$0xff] }
  0x47   :  { %716 = vrot.lane.b32.xlu1 %v1735_v29, %s1941_s22 }
  0x4a   :  { %762 = vrot.lane.b32.xlu0 %v1742_v25, %s1942_s12 }
  0x4b   :  { %764 = vrot.lane.b32.xlu1 %v1743_v31, %s1942_s12 }
  0x4e   :  { %810 = vrot.lane.b32.xlu0 %v1750_v26, %s1943_s27 }
  0x4f   :  { %670 = vrot.lane.b32.xlu1 %v1728_v33, %s1940_s21 }
  0x52   :  { %812 = vrot.lane.b32.xlu0 %v1751_v28, %s1943_s27 }
  0x53   :  { %672 = vrot.lane.b32.xlu1 %v1729_v35, %s1940_s21  ;;  %v1724_v35 = vld [vmem:[%s2761_s0 + $0x70] sm:$0xff] }
  0x56   :  { %718 = vrot.lane.b32.xlu0 %v1736_v30, %s1941_s22 }
  0x57   :  { %720 = vrot.lane.b32.xlu1 %v1737_v37, %s1941_s22 }
  0x5a   :  { %766 = vrot.lane.b32.xlu0 %v1744_v32, %s1942_s12 }
  0x5b   :  { %768 = vrot.lane.b32.xlu1 %v1745_v39, %s1942_s12 }
  0x5e   :  { %814 = vrot.lane.b32.xlu0 %v1752_v34, %s1943_s27 }
  0x5f   :  { %674 = vrot.lane.b32.xlu1 %v1730_v41, %s1940_s21 }
  0x62   :  { %816 = vrot.lane.b32.xlu0 %v1753_v36, %s1943_s27 }
  0x63   :  { %676 = vrot.lane.b32.xlu1 %v1731_v43, %s1940_s21 }
  0x66   :  { %722 = vrot.lane.b32.xlu0 %v1738_v38, %s1941_s22 }
  0x67   :  { %724 = vrot.lane.b32.xlu1 %v1739_v44, %s1941_s22 }
  0x6a   :  { %770 = vrot.lane.b32.xlu0 %v1746_v40, %s1942_s12 }
  0x6e   :  { %818 = vrot.lane.b32.xlu0 %v1754_v42, %s1943_s27 }
  0x74   :  { %v82_v45 = vpop.permute.xlu0 %81 }
  0x75   :  { %v132_v46 = vpop.permute.xlu1 %131  ;;  %106 = vst.msk [vmem:[#allocation2] sm:$0xff] %vm105_vm3, %v82_v45  ;;  %v1747_v45 = vld [vmem:[%s2761_s0 + $0x6b] sm:$0xff] }
  0x76   :  { %156 = vst.msk [vmem:[#allocation2] sm:$0xff] %vm155_vm4, %v132_v46  ;;  %772 = vrot.lane.b32.xlu1 %v1747_v45, %s1942_s12  ;;  %v1732_v46 = vld [vmem:[%s2761_s0 + $0x71] sm:$0xff] }
  0x78   :  { %v84_v47 = vpop.permute.xlu0 %83 }
  0x79   :  { %v134_v48 = vpop.permute.xlu1 %133  ;;  %107 = vst.msk [vmem:[#allocation2 + $0x8] sm:$0xff] %vm105_vm3, %v84_v47  ;;  %v1718_v47 = vld [vmem:[%s2761_s0 + $0x40] sm:$0xff] }
  0x7a   :  { %157 = vst.msk [vmem:[#allocation2 + $0x8] sm:$0xff] %vm155_vm4, %v134_v48  ;;  %678 = vrot.lane.b32.xlu1 %v1732_v46, %s1940_s21 }
  0x7c   :  { %v182_v49 = vpop.permute.xlu0 %181 }
  0x7d   :  { %v184_v50 = vpop.permute.xlu1 %183  ;;  %206 = vst.msk [vmem:[#allocation2] sm:$0xff] %vm205_vm5, %v182_v49  ;;  %v1719_v49 = vld [vmem:[%s2761_s0 + $0x48] sm:$0xff] }
  0x7e   :  { %207 = vst.msk [vmem:[#allocation2 + $0x8] sm:$0xff] %vm205_vm5, %v184_v50  ;;  %v1720_v50 = vld [vmem:[%s2761_s0 + $0x50] sm:$0xff] }
  0x80   :  { %v232_v51 = vpop.permute.xlu0 %231 }
  0x81   :  { %v86_v52 = vpop.permute.xlu1 %85  ;;  %256 = vst.msk [vmem:[#allocation2] sm:$0xff] %vm255_vm6, %v232_v51  ;;  %v1721_v51 = vld [vmem:[%s2761_s0 + $0x58] sm:$0xff] }
  0x82   :  { %108 = vst.msk [vmem:[#allocation2 + $0x10] sm:$0xff] %vm105_vm3, %v86_v52  ;;  %v1722_v52 = vld [vmem:[%s2761_s0 + $0x60] sm:$0xff] }
  0x84   :  { %v234_v53 = vpop.permute.xlu0 %233 }
  0x85   :  { %v88_v54 = vpop.permute.xlu1 %87  ;;  %257 = vst.msk [vmem:[#allocation2 + $0x8] sm:$0xff] %vm255_vm6, %v234_v53  ;;  %v1723_v53 = vld [vmem:[%s2761_s0 + $0x68] sm:$0xff] }
  0x86   :  { %109 = vst.msk [vmem:[#allocation2 + $0x18] sm:$0xff] %vm105_vm3, %v88_v54 }
  0x88   :  { %v136_v55 = vpop.permute.xlu0 %135  ;;  %v265_v57 = vld [vmem:[#allocation2] sm:$0xff] }
  0x89   :  { %v138_v56 = vpop.permute.xlu1 %137  ;;  %158 = vst.msk [vmem:[#allocation2 + $0x10] sm:$0xff] %vm155_vm4, %v136_v55  ;;  %1828 = vmatprep.mubr.msk.f32.mxu0 %vm279_vm7, %v265_v57 }
  0x8a   :  { %159 = vst.msk [vmem:[#allocation2 + $0x18] sm:$0xff] %vm155_vm4, %v138_v56 }
  0x8b   :  { %642 = vst.msk [vmem:[#allocation2] sm:$0xff] %vm55_vm0, %v1718_v47 }
  0x8c   :  { %v186_v58 = vpop.permute.xlu0 %185  ;;  %v266_v60 = vld [vmem:[#allocation2 + $0x8] sm:$0xff] }
  0x8d   :  { %v188_v59 = vpop.permute.xlu1 %187  ;;  %208 = vst.msk [vmem:[#allocation2 + $0x10] sm:$0xff] %vm205_vm5, %v186_v58  ;;  %1829 = vmatmul.mubr.msk.f32.vlgmr.msra.gmra.mxu0 %vm279_vm7, %v266_v60 }
  0x8e   :  { %209 = vst.msk [vmem:[#allocation2 + $0x18] sm:$0xff] %vm205_vm5, %v188_v59  ;;  %v2369_v59 = vld [vmem:[%s2763_s2] ss:$0 sm:$0xff] }
  0x8f   :  { %643 = vst.msk [vmem:[#allocation2 + $0x8] sm:$0xff] %vm55_vm0, %v1719_v49 }
  0x90   :  { %v236_v61 = vpop.permute.xlu0 %235 }
  0x91   :  { %v90_v62 = vpop.permute.xlu1 %89  ;;  %258 = vst.msk [vmem:[#allocation2 + $0x10] sm:$0xff] %vm255_vm6, %v236_v61 }
  0x92   :  { %110 = vst.msk [vmem:[#allocation2 + $0x20] sm:$0xff] %vm105_vm3, %v90_v62 }
  0x94   :  { %v238_v63 = vpop.permute.xlu0 %237 }
  0x95   :  { %v92_v0 = vpop.permute.xlu1 %91  ;;  %259 = vst.msk [vmem:[#allocation2 + $0x18] sm:$0xff] %vm255_vm6, %v238_v63 }
  0x96   :  { %111 = vst.msk [vmem:[#allocation2 + $0x28] sm:$0xff] %vm105_vm3, %v92_v0 }
  0x98   :  { %v140_v1 = vpop.permute.xlu0 %139  ;;  %v267_v3 = vld [vmem:[#allocation2 + $0x10] sm:$0xff] }
  0x99   :  { %v142_v2 = vpop.permute.xlu1 %141  ;;  %160 = vst.msk [vmem:[#allocation2 + $0x20] sm:$0xff] %vm155_vm4, %v140_v1  ;;  %1831 = vmatprep.mubr.msk.f32.mxu0 %vm279_vm7, %v267_v3 }
  0x9a   :  { %161 = vst.msk [vmem:[#allocation2 + $0x28] sm:$0xff] %vm155_vm4, %v142_v2 }
  0x9b   :  { %644 = vst.msk [vmem:[#allocation2 + $0x10] sm:$0xff] %vm55_vm0, %v1720_v50 }
  0x9c   :  { %v190_v4 = vpop.permute.xlu0 %189  ;;  %v268_v6 = vld [vmem:[#allocation2 + $0x18] sm:$0xff] }
  0x9d   :  { %v192_v5 = vpop.permute.xlu1 %191  ;;  %210 = vst.msk [vmem:[#allocation2 + $0x20] sm:$0xff] %vm205_vm5, %v190_v4  ;;  %1832 = vmatmul.mubr.msk.f32.gmra.mxu0 %vm279_vm7, %v268_v6 }
  0x9e   :  { %211 = vst.msk [vmem:[#allocation2 + $0x28] sm:$0xff] %vm205_vm5, %v192_v5 }
  0x9f   :  { %645 = vst.msk [vmem:[#allocation2 + $0x18] sm:$0xff] %vm55_vm0, %v1721_v51 }
  0xa0   :  { %v240_v7 = vpop.permute.xlu0 %239 }
  0xa1   :  { %v94_v8 = vpop.permute.xlu1 %93  ;;  %260 = vst.msk [vmem:[#allocation2 + $0x20] sm:$0xff] %vm255_vm6, %v240_v7 }
  0xa2   :  { %112 = vst.msk [vmem:[#allocation2 + $0x30] sm:$0xff] %vm105_vm3, %v94_v8 }
  0xa4   :  { %v242_v9 = vpop.permute.xlu0 %241 }
  0xa5   :  { %v96_v10 = vpop.permute.xlu1 %95  ;;  %261 = vst.msk [vmem:[#allocation2 + $0x28] sm:$0xff] %vm255_vm6, %v242_v9 }
  0xa6   :  { %114 = vst.msk [vmem:[#allocation2 + $0x38] sm:$0xf] %vm113_vm8, %v96_v10 }
  0xa8   :  { %v144_v11 = vpop.permute.xlu0 %143  ;;  %v269_v15 = vld [vmem:[#allocation2 + $0x20] sm:$0xff] }
  0xa9   :  { %v146_v14 = vpop.permute.xlu1 %145  ;;  %162 = vst.msk [vmem:[#allocation2 + $0x30] sm:$0xff] %vm155_vm4, %v144_v11  ;;  %1834 = vmatprep.mubr.msk.f32.mxu0 %vm279_vm7, %v269_v15 }
  0xaa   :  { %164 = vst.msk [vmem:[#allocation2 + $0x38] sm:$0xf] %vm163_vm9, %v146_v14 }
  0xab   :  { %646 = vst.msk [vmem:[#allocation2 + $0x20] sm:$0xff] %vm55_vm0, %v1722_v52 }
  0xac   :  { %v194_v16 = vpop.permute.xlu0 %193  ;;  %v270_v19 = vld [vmem:[#allocation2 + $0x28] sm:$0xff] }
  0xad   :  { %v196_v18 = vpop.permute.xlu1 %195  ;;  %212 = vst.msk [vmem:[#allocation2 + $0x30] sm:$0xff] %vm205_vm5, %v194_v16  ;;  %1835 = vmatmul.mubr.msk.f32.gmra.mxu0 %vm279_vm7, %v270_v19 }
  0xae   :  { %214 = vst.msk [vmem:[#allocation2 + $0x38] sm:$0xf] %vm213_vm10, %v196_v18 }
  0xaf   :  { %647 = vst.msk [vmem:[#allocation2 + $0x28] sm:$0xff] %vm55_vm0, %v1723_v53 }
  0xb0   :  { %v244_v20 = vpop.permute.xlu0 %243 }
  0xb1   :  { %v246_v21 = vpop.permute.xlu1 %245  ;;  %262 = vst.msk [vmem:[#allocation2 + $0x30] sm:$0xff] %vm255_vm6, %v244_v20 }
  0xb2   :  { %264 = vst.msk [vmem:[#allocation2 + $0x38] sm:$0xf] %vm263_vm11, %v246_v21 }
  0xb4   :  { %v667_v48 = vpop.permute.xlu0 %666 }
  0xb5   :  { %690 = vst.msk [vmem:[#allocation2] sm:$0xff] %vm105_vm3, %v667_v48  ;;  %v669_v57 = vpop.permute.xlu1 %668 }
  0xb6   :  { %691 = vst.msk [vmem:[#allocation2 + $0x8] sm:$0xff] %vm105_vm3, %v669_v57  ;;  %v2431_v57 = vld [vmem:[%s2764_s3] sm:$0xff] }
  0xb8   :  { %v271_v24 = vld [vmem:[#allocation2 + $0x30] sm:$0xff]  ;;  %v715_v54 = vpop.permute.xlu0 %714 }
  0xb9   :  { %v272_v23 = vld [vmem:[#allocation2 + $0x38] sm:$0xf]  ;;  %1837 = vmatprep.mubr.msk.f32.mxu0 %vm279_vm7, %v271_v24  ;;  %738 = vst.msk [vmem:[#allocation2] sm:$0xff] %vm155_vm4, %v715_v54  ;;  %v717_v60 = vpop.permute.xlu1 %716  ;;  %v2417_v54 = vld [vmem:[%s2764_s3 + $0x10] sm:$0xff] }
  0xba   :  { %649 = vst.msk [vmem:[#allocation2 + $0x38] sm:$0xf] %vm63_vm2, %v1725_v22  ;;  %1838 = vmatmul.mubr.msk.f32.gmra.mxu0 %vm279_vm7, %v272_v23  ;;  %1840 = vmatprep.subr.mxu0 %v2417_v54  ;;  %vm525_vm2 = vcmask 195584  }
  0xbb   :  { %739 = vst.msk [vmem:[#allocation2 + $0x8] sm:$0xff] %vm155_vm4, %v717_v60  ;;  %1841 = vmatpush3.msra.mxu0 %v2417_v54 }
  0xbc   :  { %v763_v55 = vpop.permute.xlu0 %762  ;;  %648 = vst.msk [vmem:[#allocation2 + $0x30] sm:$0xff] %vm55_vm0, %v1724_v35  ;;  %vm509_vm0 = vcmask 195712  }
  0xbd   :  { %786 = vst.msk [vmem:[#allocation2] sm:$0xff] %vm205_vm5, %v763_v55  ;;  %v765_v3 = vpop.permute.xlu1 %764  ;;  %v2422_v55 = vld [vmem:[%s2764_s3 + $0x8] sm:$0xff] }
  0xbe   :  { %787 = vst.msk [vmem:[#allocation2 + $0x8] sm:$0xff] %vm205_vm5, %v765_v3  ;;  %1842 = vmatprep.subr.mxu0 %v2422_v55 }
  0xbf   :  { %1843 = vmatpush3.msra.mxu0 %v2422_v55 }
  0xc0   :  { %v811_v56 = vpop.permute.xlu0 %810  ;;  %1844 = vmatprep.subr.mxu0 %v2431_v57 }
  0xc1   :  { %834 = vst.msk [vmem:[#allocation2] sm:$0xff] %vm255_vm6, %v811_v56  ;;  %v671_v6 = vpop.permute.xlu1 %670  ;;  %1845 = vmatpush3.msra.mxu0 %v2431_v57 }
  0xc2   :  { %692 = vst.msk [vmem:[#allocation2 + $0x10] sm:$0xff] %vm105_vm3, %v671_v6  ;;  %1852 = vmatprep.subr.msk.mxu0 %vm304_vm1, %v2065_v12  ;;  %v1755_v6 = vld [vmem:[%s2761_s0 + $0x6c] sm:$0xff] }
  0xc4   :  { %v813_v58 = vpop.permute.xlu0 %812 }
  0xc5   :  { %835 = vst.msk [vmem:[#allocation2 + $0x8] sm:$0xff] %vm255_vm6, %v813_v58  ;;  %v673_v8 = vpop.permute.xlu1 %672 }
  0xc6   :  { %693 = vst.msk [vmem:[#allocation2 + $0x18] sm:$0xff] %vm105_vm3, %v673_v8  ;;  %v1740_v8 = vld [vmem:[%s2761_s0 + $0x72] sm:$0xff] }
  0xc8   :  { %v719_v61 = vpop.permute.xlu0 %718 }
  0xc9   :  { %740 = vst.msk [vmem:[#allocation2 + $0x10] sm:$0xff] %vm155_vm4, %v719_v61  ;;  %v721_v15 = vpop.permute.xlu1 %720 }
  0xca   :  { %741 = vst.msk [vmem:[#allocation2 + $0x18] sm:$0xff] %vm155_vm4, %v721_v15  ;;  %v1757_v15 = vld [vmem:[%s2761_s0 + $0x7c] sm:$0xf] }
  0xcc   :  { %v767_v4 = vpop.permute.xlu0 %766 }
  0xcd   :  { %788 = vst.msk [vmem:[#allocation2 + $0x10] sm:$0xff] %vm205_vm5, %v767_v4  ;;  %v769_v23 = vpop.permute.xlu1 %768 }
  0xce   :  { %789 = vst.msk [vmem:[#allocation2 + $0x18] sm:$0xff] %vm205_vm5, %v769_v23 }
  0xd0   :  { %v815_v7 = vpop.permute.xlu0 %814 }
  0xd1   :  { %836 = vst.msk [vmem:[#allocation2 + $0x10] sm:$0xff] %vm255_vm6, %v815_v7  ;;  %v675_v26 = vpop.permute.xlu1 %674  ;;  %v1733_v7 = vld [vmem:[%s2761_s0 + $0x79] sm:$0xf] }
  0xd2   :  { %694 = vst.msk [vmem:[#allocation2 + $0x20] sm:$0xff] %vm105_vm3, %v675_v26 }
  0xd4   :  { %v817_v9 = vpop.permute.xlu0 %816 }
  0xd5   :  { %837 = vst.msk [vmem:[#allocation2 + $0x18] sm:$0xff] %vm255_vm6, %v817_v9  ;;  %v677_v29 = vpop.permute.xlu1 %676  ;;  %v1741_v9 = vld [vmem:[%s2761_s0 + $0x7a] sm:$0xf] }
  0xd6   :  { %695 = vst.msk [vmem:[#allocation2 + $0x28] sm:$0xff] %vm105_vm3, %v677_v29 }
  0xd8   :  { %v723_v16 = vpop.permute.xlu0 %722 }
  0xd9   :  { %742 = vst.msk [vmem:[#allocation2 + $0x20] sm:$0xff] %vm155_vm4, %v723_v16  ;;  %v725_v33 = vpop.permute.xlu1 %724 }
  0xda   :  { %743 = vst.msk [vmem:[#allocation2 + $0x28] sm:$0xff] %vm155_vm4, %v725_v33  ;;  %v843_v33 = vld [vmem:[#allocation2 + $0x8] sm:$0xff] }
  0xdc   :  { %v771_v24 = vpop.permute.xlu0 %770 }
  0xdd   :  { %790 = vst.msk [vmem:[#allocation2 + $0x20] sm:$0xff] %vm205_vm5, %v771_v24 }
  0xe0   :  { %v819_v28 = vpop.permute.xlu0 %818 }
  0xe1   :  { %838 = vst.msk [vmem:[#allocation2 + $0x20] sm:$0xff] %vm255_vm6, %v819_v28 }
  0xe8   :  { %v773_v40 = vpop.permute.xlu1 %772 }
  0xe9   :  { %791 = vst.msk [vmem:[#allocation2 + $0x28] sm:$0xff] %vm205_vm5, %v773_v40 }
  0xec   :  { %v679_v42 = vpop.permute.xlu1 %678 }
  0xed   :  { %696 = vst.msk [vmem:[#allocation2 + $0x30] sm:$0xff] %vm105_vm3, %v679_v42  ;;  %vm487_vm3 = vcmask 126016   ;;  %v2524_v42 = vld [vmem:[%s2765_s4] ss:$0 sm:$0xff]  ;;  %s1951_s4 = smov 112  }
 0x14d   :  { %v1830_v62 = vpop.f32.mrf.mxu0 }
 0x14e   :  { %v380_v63 = vadd.f32 %v1830_v62, %v2369_v59 }
 0x14f   :  { %v374_v0 = vpop.f32.mrf.mxu0 }
 0x150   :  { %v414_v1 = vmax.f32 %v380_v63, 0.0  ;;  %v375_v2 = vadd.f32 %v2369_v59, %v374_v0 }
 0x152   :  { %423 = vst.msk [vmem:[#allocation3 + $0x8] sm:$0xff] %vm421_vm12, %v414_v1  ;;  %v413_v5 = vmax.f32 %v375_v2, 0.0 }
 0x154   :  { %422 = vst.msk [vmem:[#allocation3] sm:$0xff] %vm421_vm12, %v413_v5 }
 0x15b   :  { %v431_v10 = vld [vmem:[#allocation3] ss:$2 sm:$0xff]  ;;  %v439_v11 = vld [vmem:[#allocation3 + $0x1] ss:$2 sm:$0xff] }
 0x15c   :  { %v446_v14 = vmax.f32 %v431_v10, %v439_v11  ;;  %v1748_v10 = vld [vmem:[%s2761_s0 + $0x73] sm:$0xff]  ;;  %v1749_v11 = vld [vmem:[%s2761_s0 + $0x7b] sm:$0xf] }
 0x15d   :  { %v1833_v18 = vpop.f32.mrf.mxu0 }
 0x15e   :  { %v390_v19 = vadd.f32 %v1833_v18, %v2369_v59  ;;  %450 = vst.msk [vmem:[#allocation4] sm:$0xff] %vm421_vm12, %v446_v14  ;;  %v1756_v14 = vld [vmem:[%s2761_s0 + $0x74] sm:$0xff] }
 0x15f   :  { %v384_v20 = vpop.f32.mrf.mxu0 }
 0x160   :  { %v416_v21 = vmax.f32 %v390_v19, 0.0  ;;  %v385_v22 = vadd.f32 %v2369_v59, %v384_v20 }
 0x162   :  { %425 = vst.msk [vmem:[#allocation3 + $0x18] sm:$0xff] %vm421_vm12, %v416_v21  ;;  %v415_v25 = vmax.f32 %v385_v22, 0.0 }
 0x164   :  { %424 = vst.msk [vmem:[#allocation3 + $0x10] sm:$0xff] %vm421_vm12, %v415_v25 }
 0x165   :  { %v455_v27 = vld [vmem:[#allocation4] sm:$0xff] }
 0x166   :  { %459 = vst.msk [vmem:[#allocation5] sm:$0xff] %vm421_vm12, %v455_v27 }
 0x16b   :  { %v433_v30 = vld [vmem:[#allocation3 + $0x10] ss:$2 sm:$0xff]  ;;  %v441_v31 = vld [vmem:[#allocation3 + $0x11] ss:$2 sm:$0xff] }
 0x16c   :  { %v447_v32 = vmax.f32 %v433_v30, %v441_v31 }
 0x16d   :  { %v1836_v34 = vpop.f32.mrf.mxu0 }
 0x16e   :  { %v400_v36 = vadd.f32 %v1836_v34, %v2369_v59  ;;  %451 = vst.msk [vmem:[#allocation4 + $0x8] sm:$0xff] %vm421_vm12, %v447_v32  ;;  %v844_v34 = vld [vmem:[#allocation2 + $0x10] sm:$0xff] }
 0x16f   :  { %v394_v37 = vpop.f32.mrf.mxu0 }
 0x170   :  { %v418_v38 = vmax.f32 %v400_v36, 0.0  ;;  %v395_v39 = vadd.f32 %v2369_v59, %v394_v37  ;;  %v845_v37 = vld [vmem:[#allocation2 + $0x18] sm:$0xff] }
 0x172   :  { %427 = vst.msk [vmem:[#allocation3 + $0x28] sm:$0xff] %vm421_vm12, %v418_v38  ;;  %v417_v41 = vmax.f32 %v395_v39, 0.0  ;;  %v846_v38 = vld [vmem:[#allocation2 + $0x20] sm:$0xff] }
 0x174   :  { %426 = vst.msk [vmem:[#allocation3 + $0x20] sm:$0xff] %vm421_vm12, %v417_v41 }
 0x175   :  { %v463_v43 = vld [vmem:[#allocation4 + $0x1] sm:$0xff] }
 0x176   :  { %v456_v44 = vld [vmem:[#allocation4 + $0x8] sm:$0xff]  ;;  %471 = vrot.lane.b32.xlu0 %v463_v43, %s1941_s22 }
 0x177   :  { %460 = vst.msk [vmem:[#allocation5 + $0x8] sm:$0xff] %vm421_vm12, %v456_v44  ;;  %v489_v45 = vld [vmem:[#allocation4 + $0x2] sm:$0xff] }
 0x17a   :  { %v1839_v46 = vpop.f32.mrf.mxu0  ;;  %497 = vrot.lane.b32.xlu0 %v489_v45, %s1943_s27 }
 0x17b   :  { %v435_v47 = vld [vmem:[#allocation3 + $0x20] ss:$2 sm:$0xff]  ;;  %v443_v48 = vld [vmem:[#allocation3 + $0x21] ss:$2 sm:$0xff]  ;;  %v410_v49 = vadd.f32 %v1839_v46, %v2369_v59 }
 0x17c   :  { %v404_v50 = vpop.f32.mrf.mxu0  ;;  %v448_v51 = vmax.f32 %v435_v47, %v443_v48 }
 0x17d   :  { %v420_v52 = vmax.f32 %v410_v49, 0.0  ;;  %v405_v53 = vadd.f32 %v2369_v59, %v404_v50 }
 0x17e   :  { %452 = vst.msk [vmem:[#allocation4 + $0x10] sm:$0xff] %vm421_vm12, %v448_v51 }
 0x17f   :  { %430 = vst.msk [vmem:[#allocation3 + $0x38] sm:$0xf] %vm429_vm13, %v420_v52  ;;  %v419_v56 = vmax.f32 %v405_v53, 0.0 }
 0x181   :  { %428 = vst.msk [vmem:[#allocation3 + $0x30] sm:$0xff] %vm421_vm12, %v419_v56 }
 0x185   :  { %v464_v58 = vld [vmem:[#allocation4 + $0x9] sm:$0xff] }
 0x186   :  { %v457_v60 = vld [vmem:[#allocation4 + $0x10] sm:$0xff]  ;;  %473 = vrot.lane.b32.xlu1 %v464_v58, %s1941_s22 }
 0x187   :  { %461 = vst.msk [vmem:[#allocation5 + $0x10] sm:$0xff] %vm421_vm12, %v457_v60  ;;  %v490_v63 = vld [vmem:[#allocation4 + $0xa] sm:$0xff] }
 0x188   :  { %v437_v61 = vld [vmem:[#allocation3 + $0x30] ss:$2 sm:$0x3f]  ;;  %v445_v62 = vld [vmem:[#allocation3 + $0x31] ss:$2 sm:$0x3f] }
 0x189   :  { %v449_v0 = vmax.f32 %v437_v61, %v445_v62 }
 0x18a   :  { %499 = vrot.lane.b32.xlu1 %v490_v63, %s1943_s27 }
 0x18b   :  { %454 = vst.msk [vmem:[#allocation4 + $0x18] sm:$0x3f] %vm2773_vm14, %v449_v0  ;;  %vm513_vm14 = vcmask 191616  }
 0x192   :  { %v466_v1 = vld [vmem:[#allocation4 + $0x19] sm:$0xf]  ;;  %v465_v2 = vld [vmem:[#allocation4 + $0x11] sm:$0xff] }
 0x193   :  { %477 = vrot.lane.b32.xlu1 %v466_v1, %s1941_s22  ;;  %475 = vrot.lane.b32.xlu0 %v465_v2, %s1941_s22  ;;  %v458_v3 = vld [vmem:[#allocation4 + $0x18] sm:$0xf] }
 0x194   :  { %462 = vst.msk [vmem:[#allocation5 + $0x18] sm:$0xf] %vm429_vm13, %v458_v3  ;;  %v492_v4 = vld [vmem:[#allocation4 + $0x1a] sm:$0xf]  ;;  %v491_v5 = vld [vmem:[#allocation4 + $0x12] sm:$0xff] }
 0x197   :  { %503 = vrot.lane.b32.xlu1 %v492_v4, %s1943_s27  ;;  %501 = vrot.lane.b32.xlu0 %v491_v5, %s1943_s27 }
 0x19b   :  { %820 = vrot.lane.b32.xlu0 %v1755_v6, %s1943_s27  ;;  %680 = vrot.lane.b32.xlu1 %v1733_v7, %s1940_s21 }
 0x19f   :  { %726 = vrot.lane.b32.xlu0 %v1740_v8, %s1941_s22  ;;  %728 = vrot.lane.b32.xlu1 %v1741_v9, %s1941_s22 }
 0x1a3   :  { %774 = vrot.lane.b32.xlu0 %v1748_v10, %s1942_s12  ;;  %776 = vrot.lane.b32.xlu1 %v1749_v11, %s1942_s12 }
 0x1a7   :  { %822 = vrot.lane.b32.xlu0 %v1756_v14, %s1943_s27  ;;  %824 = vrot.lane.b32.xlu1 %v1757_v15, %s1943_s27 }
 0x1e8   :  { %v472_v16 = vpop.permute.xlu0 %471 }
 0x1e9   :  { %484 = vst.msk [vmem:[#allocation5] sm:$0xff] %vm483_vm15, %v472_v16 }
 0x1ec   :  { %v498_v18 = vpop.permute.xlu0 %497 }
 0x1ed   :  { %510 = vst.msk [vmem:[#allocation5] sm:$0xff] %vm509_vm0, %v498_v18 }
 0x1f4   :  { %v515_v19 = vld [vmem:[#allocation5] sm:$0xff] }
 0x1f5   :  { %1846 = vmatprep.mubr.msk.f32.mxu0 %vm525_vm2, %v515_v19 }
 0x1f8   :  { %v474_v20 = vpop.permute.xlu1 %473 }
 0x1f9   :  { %485 = vst.msk [vmem:[#allocation5 + $0x8] sm:$0xff] %vm483_vm15, %v474_v20 }
 0x1fc   :  { %v500_v21 = vpop.permute.xlu1 %499 }
 0x1fd   :  { %511 = vst.msk [vmem:[#allocation5 + $0x8] sm:$0xff] %vm509_vm0, %v500_v21 }
 0x204   :  { %v516_v22 = vld [vmem:[#allocation5 + $0x8] sm:$0xff] }
 0x205   :  { %v478_v23 = vpop.permute.xlu1 %477  ;;  %v476_v24 = vpop.permute.xlu0 %475  ;;  %1847 = vmatmul.mubr.msk.f32.vlgmr.msra.gmra.mxu0 %vm525_vm2, %v516_v22 }
 0x206   :  { %488 = vst.msk [vmem:[#allocation5 + $0x18] sm:$0xf] %vm487_vm3, %v478_v23  ;;  %1853 = vmatpush3.msk.msra.mxu0 %vm304_vm1, %v2065_v12  ;;  %vm627_vm1 = vcmask 130048  }
 0x207   :  { %486 = vst.msk [vmem:[#allocation5 + $0x10] sm:$0xff] %vm483_vm15, %v476_v24  ;;  %1854 = vmatprep.subr.mxu0 %v2070_v13 }
 0x208   :  { %1855 = vmatpush3.msra.mxu0 %v2070_v13 }
 0x209   :  { %v504_v25 = vpop.permute.xlu1 %503  ;;  %v502_v26 = vpop.permute.xlu0 %501  ;;  %1856 = vmatprep.subr.mxu0 %v2089_v17 }
 0x20a   :  { %514 = vst.msk [vmem:[#allocation5 + $0x18] sm:$0xf] %vm513_vm14, %v504_v25  ;;  %1857 = vmatpush3.msra.mxu0 %v2089_v17  ;;  %v842_v17 = vld [vmem:[#allocation2] sm:$0xff] }
 0x20b   :  { %512 = vst.msk [vmem:[#allocation5 + $0x10] sm:$0xff] %vm509_vm0, %v502_v26  ;;  %1870 = vmatprep.subr.mxu0 %v2417_v54 }
 0x20d   :  { %v821_v27 = vpop.permute.xlu0 %820  ;;  %v681_v28 = vpop.permute.xlu1 %680 }
 0x20e   :  { %839 = vst.msk [vmem:[#allocation2 + $0x28] sm:$0xff] %vm255_vm6, %v821_v27 }
 0x20f   :  { %697 = vst.msk [vmem:[#allocation2 + $0x38] sm:$0xf] %vm113_vm8, %v681_v28  ;;  %vm1216_vm8 = vcmask 386304  }
 0x211   :  { %v727_v12 = vpop.permute.xlu0 %726  ;;  %v729_v13 = vpop.permute.xlu1 %728  ;;  %v518_v30 = vld [vmem:[#allocation5 + $0x18] sm:$0xf] }
 0x212   :  { %v517_v29 = vld [vmem:[#allocation5 + $0x10] sm:$0xff]  ;;  %744 = vst.msk [vmem:[#allocation2 + $0x30] sm:$0xff] %vm155_vm4, %v727_v12  ;;  %vm631_vm4 = vcmask 125952  }
 0x213   :  { %745 = vst.msk [vmem:[#allocation2 + $0x38] sm:$0xf] %vm163_vm9, %v729_v13  ;;  %1849 = vmatprep.mubr.msk.f32.mxu0 %vm525_vm2, %v517_v29  ;;  %vm1234_vm9 = vcmask 517504  }
 0x214   :  { %1850 = vmatmul.mubr.msk.f32.gmra.mxu0 %vm525_vm2, %v518_v30 }
 0x215   :  { %1858 = vmatprep.mubr.msk.f32.mxu0 %vm279_vm7, %v842_v17  ;;  %v775_v31 = vpop.permute.xlu0 %774  ;;  %v777_v32 = vpop.permute.xlu1 %776  ;;  %v847_v39 = vld [vmem:[#allocation2 + $0x28] sm:$0xff] }
 0x216   :  { %792 = vst.msk [vmem:[#allocation2 + $0x30] sm:$0xff] %vm205_vm5, %v775_v31  ;;  %vm2774_vm5 = vcmask 62464  }
 0x217   :  { %793 = vst.msk [vmem:[#allocation2 + $0x38] sm:$0xf] %vm213_vm10, %v777_v32  ;;  %vm1252_vm10 = vcmask 648704  }
 0x218   :  { %1859 = vmatmul.mubr.msk.f32.vlgmr.msra.gmra.mxu0 %vm279_vm7, %v843_v33 }
 0x219   :  { %1861 = vmatprep.mubr.msk.f32.mxu0 %vm279_vm7, %v844_v34  ;;  %1871 = vmatpush3.msra.mxu0 %v2417_v54  ;;  %v823_v35 = vpop.permute.xlu0 %822  ;;  %v825_v36 = vpop.permute.xlu1 %824 }
 0x21a   :  { %1872 = vmatprep.subr.mxu0 %v2422_v55  ;;  %840 = vst.msk [vmem:[#allocation2 + $0x30] sm:$0xff] %vm255_vm6, %v823_v35  ;;  %vm1180_vm6 = vcmask 123904  }
 0x21b   :  { %841 = vst.msk [vmem:[#allocation2 + $0x38] sm:$0xf] %vm263_vm11, %v825_v36  ;;  %1873 = vmatpush3.msra.mxu0 %v2422_v55  ;;  %vm1270_vm11 = vcmask 779904  }
 0x21c   :  { %1862 = vmatmul.mubr.msk.f32.gmra.mxu0 %vm279_vm7, %v845_v37  ;;  %1874 = vmatprep.subr.mxu0 %v2431_v57 }
 0x21d   :  { %1864 = vmatprep.mubr.msk.f32.mxu0 %vm279_vm7, %v846_v38  ;;  %1875 = vmatpush3.msra.mxu0 %v2431_v57 }
 0x220   :  { %1865 = vmatmul.mubr.msk.f32.gmra.mxu0 %vm279_vm7, %v847_v39 }
 0x221   :  { %v848_v40 = vld [vmem:[#allocation2 + $0x30] sm:$0xff] }
 0x222   :  { %v849_v41 = vld [vmem:[#allocation2 + $0x38] sm:$0xf]  ;;  %1867 = vmatprep.mubr.msk.f32.mxu0 %vm279_vm7, %v848_v40 }
 0x224   :  { %1868 = vmatmul.mubr.msk.f32.gmra.mxu0 %vm279_vm7, %v849_v41  ;;  %vm1198_vm7 = vcmask 255104  }
 0x2c5   :  { %v1848_v43 = vpop.f32.mrf.mxu0 }
 0x2c6   :  { %v610_v44 = vadd.f32 %v1848_v43, %v2524_v42 }
 0x2c7   :  { %v604_v45 = vpop.f32.mrf.mxu0 }
 0x2c8   :  { %v624_v46 = vmax.f32 %v610_v44, 0.0  ;;  %v605_v47 = vadd.f32 %v2524_v42, %v604_v45 }
 0x2ca   :  { %629 = vst.msk [vmem:[#allocation6 + $0x8] sm:$0xff] %vm627_vm1, %v624_v46  ;;  %v623_v48 = vmax.f32 %v605_v47, 0.0 }
 0x2cc   :  { %628 = vst.msk [vmem:[#allocation6] sm:$0xff] %vm627_vm1, %v623_v48 }
 0x2d4   :  { %v1851_v49 = vpop.f32.mrf.mxu0 }
 0x2d5   :  { %v620_v50 = vadd.f32 %v1851_v49, %v2524_v42 }
 0x2d6   :  { %v614_v51 = vpop.f32.mrf.mxu0 }
 0x2d7   :  { %v626_v52 = vmax.f32 %v620_v50, 0.0  ;;  %v615_v53 = vadd.f32 %v2524_v42, %v614_v51 }
 0x2d8   :  { %v1860_v54 = vpop.f32.mrf.mxu0 }
 0x2d9   :  { %632 = vst.msk [vmem:[#allocation6 + $0x18] sm:$0xf] %vm631_vm4, %v626_v52  ;;  %v625_v55 = vmax.f32 %v615_v53, 0.0  ;;  %v946_v56 = vadd.f32 %v1860_v54, %v2369_v59  ;;  %v1415_v52 = vld [vmem:[%s2766_s5 + $0x78] sm:$0xff]  ;;  %v1944_v53 = vmov 0.0   ;;  %v1414_v54 = vld [vmem:[%s2766_s5 + $0x70] sm:$0xff] }
 0x2da   :  { %v940_v57 = vpop.f32.mrf.mxu0  ;;  %1448 = vmatprep.subr.mxu1 %v1944_v53  ;;  %1882 = vmatprep.subr.mxu0 %v1944_v53 }
 0x2db   :  { %630 = vst.msk [vmem:[#allocation6 + $0x10] sm:$0xff] %vm627_vm1, %v625_v55  ;;  %v980_v58 = vmax.f32 %v946_v56, 0.0  ;;  %v941_v60 = vadd.f32 %v2369_v59, %v940_v57  ;;  %1449 = vmatpush1.msra.mxu1 %v1415_v52  ;;  %v1413_v55 = vld [vmem:[%s2766_s5 + $0x68] sm:$0xff]  ;;  %v1412_v56 = vld [vmem:[%s2766_s5 + $0x60] sm:$0xff]  ;;  %v1411_v57 = vld [vmem:[%s2766_s5 + $0x58] sm:$0xff] }
 0x2dc   :  { %v1863_v61 = vpop.f32.mrf.mxu0  ;;  %1450 = vmatprep.subr.mxu1 %v1944_v53 }
 0x2dd   :  { %988 = vst.msk [vmem:[#allocation3 + $0x8] sm:$0xff] %vm421_vm12, %v980_v58  ;;  %v979_v62 = vmax.f32 %v941_v60, 0.0  ;;  %v956_v63 = vadd.f32 %v1863_v61, %v2369_v59  ;;  %1451 = vmatpush1.msra.mxu1 %v1414_v54  ;;  %v1410_v58 = vld [vmem:[%s2766_s5 + $0x50] sm:$0xff]  ;;  %v1409_v60 = vld [vmem:[%s2766_s5 + $0x48] sm:$0xff]  ;;  %v1408_v61 = vld [vmem:[%s2766_s5 + $0x40] sm:$0xff] }
 0x2de   :  { %v950_v0 = vpop.f32.mrf.mxu0  ;;  %1452 = vmatprep.subr.mxu1 %v1944_v53 }
 0x2df   :  { %987 = vst.msk [vmem:[#allocation3] sm:$0xff] %vm421_vm12, %v979_v62  ;;  %v982_v1 = vmax.f32 %v956_v63, 0.0  ;;  %v951_v2 = vadd.f32 %v2369_v59, %v950_v0  ;;  %1453 = vmatpush1.msra.mxu1 %v1413_v55  ;;  %v1407_v62 = vld [vmem:[%s2766_s5 + $0x38] sm:$0xff]  ;;  %v1406_v63 = vld [vmem:[%s2766_s5 + $0x30] sm:$0xff] }
 0x2e0   :  { %v1866_v3 = vpop.f32.mrf.mxu0  ;;  %1454 = vmatprep.subr.mxu1 %v1944_v53 }
 0x2e1   :  { %990 = vst.msk [vmem:[#allocation3 + $0x18] sm:$0xff] %vm421_vm12, %v982_v1  ;;  %v981_v4 = vmax.f32 %v951_v2, 0.0  ;;  %v966_v5 = vadd.f32 %v1866_v3, %v2369_v59  ;;  %1455 = vmatpush1.msra.mxu1 %v1412_v56 }
 0x2e2   :  { %v960_v6 = vpop.f32.mrf.mxu0  ;;  %1456 = vmatprep.subr.mxu1 %v1944_v53 }
 0x2e3   :  { %989 = vst.msk [vmem:[#allocation3 + $0x10] sm:$0xff] %vm421_vm12, %v981_v4  ;;  %v984_v7 = vmax.f32 %v966_v5, 0.0  ;;  %v961_v8 = vadd.f32 %v2369_v59, %v960_v6  ;;  %1457 = vmatpush1.msra.mxu1 %v1411_v57  ;;  %v1945_v5 = vmov 1983009808  }
 0x2e4   :  { %v1869_v9 = vpop.f32.mrf.mxu0  ;;  %1458 = vmatprep.subr.mxu1 %v1944_v53  ;;  %v1189_v6 = vunpack.c.l.s4 %v1945_v5 }
 0x2e5   :  { %992 = vst.msk [vmem:[#allocation3 + $0x28] sm:$0xff] %vm421_vm12, %v984_v7  ;;  %v983_v10 = vmax.f32 %v961_v8, 0.0  ;;  %v976_v11 = vadd.f32 %v1869_v9, %v2369_v59  ;;  %1459 = vmatpush1.msra.mxu1 %v1410_v58  ;;  %v1191_v7 = vlaneseq  ;;  %v1405_v8 = vld [vmem:[%s2766_s5 + $0x28] sm:$0xff] }
 0x2e6   :  { %v995_v14 = vld [vmem:[#allocation3] ss:$2 sm:$0xff]  ;;  %v999_v15 = vld [vmem:[#allocation3 + $0x1] ss:$2 sm:$0xff]  ;;  %v970_v16 = vpop.f32.mrf.mxu0  ;;  %1460 = vmatprep.subr.mxu1 %v1944_v53 }
 0x2e7   :  { %v1003_v18 = vmax.f32 %v995_v14, %v999_v15  ;;  %991 = vst.msk [vmem:[#allocation3 + $0x20] sm:$0xff] %vm421_vm12, %v983_v10  ;;  %v986_v19 = vmax.f32 %v976_v11, 0.0  ;;  %v971_v20 = vadd.f32 %v2369_v59, %v970_v16  ;;  %1461 = vmatpush1.msra.mxu1 %v1409_v60  ;;  %v1404_v10 = vld [vmem:[%s2766_s5 + $0x20] sm:$0xff]  ;;  %v1190_v11 = vunpack.c.0.s8 %v1189_v6  ;;  %v1403_v15 = vld [vmem:[%s2766_s5 + $0x18] sm:$0xff]  ;;  %v1402_v16 = vld [vmem:[%s2766_s5 + $0x10] sm:$0xff] }
 0x2e8   :  { %1462 = vmatprep.subr.mxu1 %v1944_v53  ;;  %v1192_v14 = vshrl.u32 %v1191_v7, 7  ;;  %v1425_v7 = vld [vmem:[%s2766_s5 + $0xc8] sm:$0xff] }
 0x2e9   :  { %1007 = vst.msk [vmem:[#allocation4] sm:$0xff] %vm421_vm12, %v1003_v18  ;;  %v985_v21 = vmax.f32 %v971_v20, 0.0  ;;  %1463 = vmatpush1.msra.mxu1 %v1408_v61 }
 0x2ea   :  { %994 = vst.msk [vmem:[#allocation3 + $0x38] sm:$0xf] %vm429_vm13, %v986_v19  ;;  %v996_v22 = vld [vmem:[#allocation3 + $0x10] ss:$2 sm:$0xff]  ;;  %v1000_v23 = vld [vmem:[#allocation3 + $0x11] ss:$2 sm:$0xff]  ;;  %1464 = vmatprep.subr.mxu1 %v1944_v53 }
 0x2eb   :  { %v1004_v24 = vmax.f32 %v996_v22, %v1000_v23  ;;  %993 = vst.msk [vmem:[#allocation3 + $0x30] sm:$0xff] %vm421_vm12, %v985_v21  ;;  %1465 = vmatpush1.msra.mxu1 %v1407_v62  ;;  %v2641_v23 = vsub.s32 %v1190_v11, %v1192_v14  ;;  %v1427_v62 = vld [vmem:[%s2766_s5 + $0xd8] sm:$0xff] }
 0x2ec   :  { %1466 = vmatprep.subr.mxu1 %v1944_v53 }
 0x2ed   :  { %1008 = vst.msk [vmem:[#allocation4 + $0x8] sm:$0xff] %vm421_vm12, %v1004_v24  ;;  %1467 = vmatpush1.msra.mxu1 %v1406_v63  ;;  %v1401_v24 = vld [vmem:[%s2766_s5 + $0x8] sm:$0xff] }
 0x2ee   :  { %v997_v25 = vld [vmem:[#allocation3 + $0x20] ss:$2 sm:$0xff]  ;;  %v1001_v26 = vld [vmem:[#allocation3 + $0x21] ss:$2 sm:$0xff]  ;;  %1468 = vmatprep.subr.mxu1 %v1944_v53 }
 0x2ef   :  { %v1005_v27 = vmax.f32 %v997_v25, %v1001_v26  ;;  %1469 = vmatpush1.msra.mxu1 %v1405_v8  ;;  %v1400_v25 = vld [vmem:[%s2766_s5] sm:$0xff] }
 0x2f0   :  { %v1011_v28 = vld [vmem:[#allocation4] sm:$0xff]  ;;  %1470 = vmatprep.subr.mxu1 %v1944_v53 }
 0x2f1   :  { %1009 = vst.msk [vmem:[#allocation4 + $0x10] sm:$0xff] %vm421_vm12, %v1005_v27  ;;  %1015 = vst.msk [vmem:[#allocation5] sm:$0xff] %vm421_vm12, %v1011_v28  ;;  %1471 = vmatpush1.msra.mxu1 %v1404_v10 }
 0x2f2   :  { %v998_v59 = vld [vmem:[#allocation3 + $0x30] ss:$2 sm:$0x3f]  ;;  %v1002_v12 = vld [vmem:[#allocation3 + $0x31] ss:$2 sm:$0x3f]  ;;  %1472 = vmatprep.subr.mxu1 %v1944_v53 }
 0x2f3   :  { %v1006_v13 = vmax.f32 %v998_v59, %v1002_v12  ;;  %1473 = vmatpush1.msra.mxu1 %v1403_v15 }
 0x2f4   :  { %v1019_v29 = vld [vmem:[#allocation4 + $0x1] sm:$0xff]  ;;  %1474 = vmatprep.subr.mxu1 %v1944_v53 }
 0x2f5   :  { %v1012_v30 = vld [vmem:[#allocation4 + $0x8] sm:$0xff]  ;;  %1010 = vst.msk [vmem:[#allocation4 + $0x18] sm:$0x3f] %vm2774_vm5, %v1006_v13  ;;  %1027 = vrot.lane.b32.xlu0 %v1019_v29, %s1941_s22  ;;  %1475 = vmatpush1.msra.mxu1 %v1402_v16  ;;  %v1424_v16 = vld [vmem:[%s2766_s5 + $0xc0] sm:$0xff] }
 0x2f6   :  { %1016 = vst.msk [vmem:[#allocation5 + $0x8] sm:$0xff] %vm421_vm12, %v1012_v30  ;;  %v1043_v31 = vld [vmem:[#allocation4 + $0x2] sm:$0xff]  ;;  %1476 = vmatprep.subr.mxu1 %v1944_v53 }
 0x2f7   :  { %1477 = vmatpush1.msra.mxu1 %v1401_v24 }
 0x2f8   :  { %v1020_v17 = vld [vmem:[#allocation4 + $0x9] sm:$0xff]  ;;  %1478 = vmatprep.subr.mxu1 %v1944_v53 }
 0x2f9   :  { %v1013_v32 = vld [vmem:[#allocation4 + $0x10] sm:$0xff]  ;;  %1029 = vrot.lane.b32.xlu1 %v1020_v17, %s1941_s22  ;;  %1051 = vrot.lane.b32.xlu0 %v1043_v31, %s1943_s27 }
 0x2fa   :  { %1017 = vst.msk [vmem:[#allocation5 + $0x10] sm:$0xff] %vm421_vm12, %v1013_v32  ;;  %v1044_v33 = vld [vmem:[#allocation4 + $0xa] sm:$0xff]  ;;  %1479 = vmatpush1.msra.mxu1 %v1400_v25  ;;  %vm1288_vm12 = vcmask 911104  }
 0x2fb   :  { %1488 = vmatprep.subr.mxu1 %v1944_v53  ;;  %v1421_v25 = vld [vmem:[%s2766_s5 + $0xa8] sm:$0xff] }
 0x2fc   :  { %v1021_v34 = vld [vmem:[#allocation4 + $0x11] sm:$0xff]  ;;  %v1022_v36 = vld [vmem:[#allocation4 + $0x19] sm:$0xf]  ;;  %1489 = vmatpush2.msra.mxu1 %v1427_v62 }
 0x2fd   :  { %1053 = vrot.lane.b32.xlu1 %v1044_v33, %s1943_s27  ;;  %1031 = vrot.lane.b32.xlu0 %v1021_v34, %s1941_s22  ;;  %v1014_v35 = vld [vmem:[#allocation4 + $0x18] sm:$0xf] }
 0x2fe   :  { %1018 = vst.msk [vmem:[#allocation5 + $0x18] sm:$0xf] %vm429_vm13, %v1014_v35  ;;  %v1045_v37 = vld [vmem:[#allocation4 + $0x12] sm:$0xff]  ;;  %v1046_v38 = vld [vmem:[#allocation4 + $0x1a] sm:$0xf]  ;;  %1490 = vmatprep.subr.mxu1 %v1944_v53  ;;  %vm1306_vm13 = vcmask 1042304  }
 0x301   :  { %1033 = vrot.lane.b32.xlu1 %v1022_v36, %s1941_s22  ;;  %1055 = vrot.lane.b32.xlu0 %v1045_v37, %s1943_s27 }
 0x305   :  { %1057 = vrot.lane.b32.xlu1 %v1046_v38, %s1943_s27 }
 0x367   :  { %v1028_v39 = vpop.permute.xlu0 %1027 }
 0x368   :  { %1039 = vst.msk [vmem:[#allocation5] sm:$0xff] %vm483_vm15, %v1028_v39 }
 0x36b   :  { %v1030_v40 = vpop.permute.xlu1 %1029  ;;  %v1052_v41 = vpop.permute.xlu0 %1051 }
 0x36c   :  { %1040 = vst.msk [vmem:[#allocation5 + $0x8] sm:$0xff] %vm483_vm15, %v1030_v40 }
 0x36d   :  { %1063 = vst.msk [vmem:[#allocation5] sm:$0xff] %vm509_vm0, %v1052_v41 }
 0x36f   :  { %v1054_v43 = vpop.permute.xlu1 %1053  ;;  %v1032_v44 = vpop.permute.xlu0 %1031 }
 0x370   :  { %1064 = vst.msk [vmem:[#allocation5 + $0x8] sm:$0xff] %vm509_vm0, %v1054_v43 }
 0x371   :  { %1041 = vst.msk [vmem:[#allocation5 + $0x10] sm:$0xff] %vm483_vm15, %v1032_v44  ;;  %vm1952_vm15 = vmmov 0  }
 0x373   :  { %v1034_v45 = vpop.permute.xlu1 %1033  ;;  %v1056_v46 = vpop.permute.xlu0 %1055 }
 0x374   :  { %v1067_v47 = vld [vmem:[#allocation5] sm:$0xff]  ;;  %1042 = vst.msk [vmem:[#allocation5 + $0x18] sm:$0xf] %vm487_vm3, %v1034_v45 }
 0x375   :  { %1065 = vst.msk [vmem:[#allocation5 + $0x10] sm:$0xff] %vm509_vm0, %v1056_v46  ;;  %1876 = vmatprep.mubr.msk.f32.mxu0 %vm525_vm2, %v1067_v47  ;;  %vm1530_vm0 = vcmask 261120  }
 0x377   :  { %v1058_v48 = vpop.permute.xlu1 %1057  ;;  %v1068_v49 = vld [vmem:[#allocation5 + $0x8] sm:$0xff] }
 0x378   :  { %1066 = vst.msk [vmem:[#allocation5 + $0x18] sm:$0xf] %vm513_vm14, %v1058_v48  ;;  %1877 = vmatmul.mubr.msk.f32.vlgmr.msra.gmra.mxu0 %vm525_vm2, %v1068_v49  ;;  %vm1445_vm14 = vcmask 785408  }
 0x37c   :  { %v1069_v50 = vld [vmem:[#allocation5 + $0x10] sm:$0xff] }
 0x37d   :  { %1879 = vmatprep.mubr.msk.f32.mxu0 %vm525_vm2, %v1069_v50 }
 0x37f   :  { %v1070_v51 = vld [vmem:[#allocation5 + $0x18] sm:$0xf] }
 0x380   :  { %1880 = vmatmul.mubr.msk.f32.gmra.mxu0 %vm525_vm2, %v1070_v51  ;;  %vm1687_vm2 = vcmask 189440  }
 0x381   :  { %1890 = vmatprep.mubr.msk.f32.mxu0 %vm1952_vm15, %v1944_v53 }
 0x438   :  { %v1878_v0 = vpop.f32.mrf.mxu0 }
 0x439   :  { %v1155_v1 = vadd.f32 %v1878_v0, %v2524_v42 }
 0x43a   :  { %v1149_v2 = vpop.f32.mrf.mxu0 }
 0x43b   :  { %v1169_v3 = vmax.f32 %v1155_v1, 0.0  ;;  %v1150_v4 = vadd.f32 %v2524_v42, %v1149_v2 }
 0x43d   :  { %1173 = vst.msk [vmem:[#allocation6 + $0x24] sm:$0xff] %vm627_vm1, %v1169_v3  ;;  %v1168_v9 = vmax.f32 %v1150_v4, 0.0  ;;  %v1426_v4 = vld [vmem:[%s2766_s5 + $0xd0] sm:$0xff] }
 0x43e   :  { %1491 = vmatpush2.msra.mxu1 %v1426_v4 }
 0x43f   :  { %1172 = vst.msk [vmem:[#allocation6 + $0x1c] sm:$0xff] %vm627_vm1, %v1168_v9  ;;  %1492 = vmatprep.subr.mxu1 %v1944_v53 }
 0x440   :  { %v1881_v18 = vpop.f32.mrf.mxu0  ;;  %1493 = vmatpush2.msra.mxu1 %v1425_v7 }
 0x441   :  { %v1165_v19 = vadd.f32 %v1881_v18, %v2524_v42  ;;  %1494 = vmatprep.subr.mxu1 %v1944_v53 }
 0x442   :  { %v1159_v20 = vpop.f32.mrf.mxu0  ;;  %1495 = vmatpush2.msra.mxu1 %v1424_v16 }
 0x443   :  { %v1171_v21 = vmax.f32 %v1165_v19, 0.0  ;;  %v1160_v22 = vadd.f32 %v2524_v42, %v1159_v20  ;;  %1496 = vmatprep.subr.mxu1 %v1944_v53 }
 0x444   :  { %v1237_v26 = vld [vmem:[#allocation6 + $0x8] ss:$28 sm:$0x3]  ;;  %v1239_v27 = vld [vmem:[#allocation6 + $0x9] ss:$28 sm:$0x3] }
 0x445   :  { %1175 = vst.msk [vmem:[#allocation6 + $0x34] sm:$0xf] %vm631_vm4, %v1171_v21  ;;  %v1170_v28 = vmax.f32 %v1160_v22, 0.0  ;;  %v1240_v59 = vmax.f32 %v1237_v26, %v1239_v27  ;;  %v1255_v42 = vld [vmem:[#allocation6 + $0xa] ss:$28 sm:$0x3] }
 0x446   :  { %v1201_v12 = vld [vmem:[#allocation6 + $0x4] ss:$28 sm:$0x3]  ;;  %v1203_v13 = vld [vmem:[#allocation6 + $0x5] ss:$28 sm:$0x3] }
 0x447   :  { %1174 = vst.msk [vmem:[#allocation6 + $0x2c] sm:$0xff] %vm627_vm1, %v1170_v28  ;;  %v1248_v29 = vrot.slane %v1240_v59, %v2641_v23  ;;  %v1204_v30 = vmax.f32 %v1201_v12, %v1203_v13  ;;  %v1257_v17 = vld [vmem:[#allocation6 + $0xb] ss:$28 sm:$0x3]  ;;  %v1423_v21 = vld [vmem:[%s2766_s5 + $0xb8] sm:$0xff]  ;;  %v1422_v22 = vld [vmem:[%s2766_s5 + $0xb0] sm:$0xff] }
 0x448   :  { %v1258_v31 = vmax.f32 %v1255_v42, %v1257_v17  ;;  %v1273_v32 = vld [vmem:[#allocation6 + $0xc] ss:$28 sm:$0x3]  ;;  %v1275_v33 = vld [vmem:[#allocation6 + $0xd] ss:$28 sm:$0x3]  ;;  %1497 = vmatpush2.msra.mxu1 %v1423_v21 }
 0x449   :  { %1249 = vrot.lane.b32.xlu0 %v1248_v29, %s1946_s18  ;;  %v1212_v34 = vrot.slane %v1204_v30, %v2641_v23  ;;  %v1276_v36 = vmax.f32 %v1273_v32, %v1275_v33  ;;  %v1183_v37 = vld [vmem:[#allocation6 + $0x2] ss:$28 sm:$0x3]  ;;  %v1185_v38 = vld [vmem:[#allocation6 + $0x3] ss:$28 sm:$0x3]  ;;  %1498 = vmatprep.subr.mxu1 %v1944_v53 }
 0x44a   :  { %v1266_v35 = vrot.slane %v1258_v31, %v2641_v23  ;;  %v1219_v43 = vld [vmem:[#allocation6 + $0x6] ss:$28 sm:$0x3]  ;;  %v1186_v49 = vmax.f32 %v1183_v37, %v1185_v38  ;;  %v1221_v50 = vld [vmem:[#allocation6 + $0x7] ss:$28 sm:$0x3]  ;;  %1499 = vmatpush2.msra.mxu1 %v1422_v22 }
 0x44b   :  { %1213 = vrot.lane.b32.xlu1 %v1212_v34, %s1947_s19  ;;  %v1284_v46 = vrot.slane %v1276_v36, %v2641_v23  ;;  %v1176_v51 = vld [vmem:[#allocation6] ss:$28 sm:$0x3]  ;;  %v1222_v57 = vmax.f32 %v1219_v43, %v1221_v50  ;;  %v1291_v58 = vld [vmem:[#allocation6 + $0xe] ss:$28 sm:$0x3]  ;;  %1500 = vmatprep.subr.mxu1 %v1944_v53 }
 0x44c   :  { %v1366_v39 = vld [vmem:[#allocation6 + $0x18] ss:$28 sm:$0x3]  ;;  %v1368_v40 = vld [vmem:[#allocation6 + $0x19] ss:$28 sm:$0x3]  ;;  %v1194_v0 = vrot.slane %v1186_v49, %v2641_v23  ;;  %1501 = vmatpush2.msra.mxu1 %v1421_v25 }
 0x44d   :  { %1267 = vrot.lane.b32.xlu0 %v1266_v35, %s1948_s20  ;;  %v1369_v41 = vmax.f32 %v1366_v39, %v1368_v40  ;;  %v1178_v61 = vld [vmem:[#allocation6 + $0x1] ss:$28 sm:$0x3]  ;;  %v1293_v2 = vld [vmem:[#allocation6 + $0xf] ss:$28 sm:$0x3]  ;;  %v1230_v9 = vrot.slane %v1222_v57, %v2641_v23  ;;  %1502 = vmatprep.subr.mxu1 %v1944_v53 }
 0x44e   :  { %v1315_v44 = vld [vmem:[#allocation6 + $0x12] ss:$28 sm:$0x3]  ;;  %v1317_v45 = vld [vmem:[#allocation6 + $0x13] ss:$28 sm:$0x3]  ;;  %v1179_v3 = vmax.f32 %v1176_v51, %v1178_v61  ;;  %v1294_v11 = vmax.f32 %v1291_v58, %v1293_v2 }
 0x44f   :  { %v1377_v47 = vrot.slane %v1369_v41, %v2641_v23  ;;  %v1318_v48 = vmax.f32 %v1315_v44, %v1317_v45  ;;  %v1332_v52 = vld [vmem:[#allocation6 + $0x14] ss:$28 sm:$0x3]  ;;  %v1334_v54 = vld [vmem:[#allocation6 + $0x15] ss:$28 sm:$0x3] }
 0x450   :  { %v1309_v55 = vld [vmem:[#allocation6 + $0x10] ss:$28 sm:$0x3]  ;;  %v1311_v56 = vld [vmem:[#allocation6 + $0x11] ss:$28 sm:$0x3]  ;;  %v1335_v1 = vmax.f32 %v1332_v52, %v1334_v54  ;;  %v1302_v19 = vrot.slane %v1294_v11, %v2641_v23 }
 0x451   :  { %1285 = vrot.lane.b32.xlu0 %v1284_v46, %s1949_s23  ;;  %1378 = vrot.lane.b32.xlu1 %v1377_v47, %s1946_s18  ;;  %v1312_v60 = vmax.f32 %v1309_v55, %v1311_v56  ;;  %v1326_v63 = vrot.slane %v1318_v48, %v2641_v23  ;;  %v1349_v5 = vld [vmem:[#allocation6 + $0x16] ss:$28 sm:$0x3]  ;;  %v1351_v6 = vld [vmem:[#allocation6 + $0x17] ss:$28 sm:$0x3] }
 0x452   :  { %1181 = vst.msk [vmem:[#allocation7] sm:$0x3] %vm1180_vm6, %v1179_v3  ;;  %v1343_v8 = vrot.slane %v1335_v1, %v2641_v23  ;;  %v1352_v10 = vmax.f32 %v1349_v5, %v1351_v6  ;;  %v1383_v14 = vld [vmem:[#allocation6 + $0x1a] ss:$28 sm:$0x3]  ;;  %v1420_v26 = vld [vmem:[%s2766_s5 + $0xa0] sm:$0xff] }
 0x453   :  { %1313 = vst.msk [vmem:[#allocation7 + $0x2] sm:$0x3] %vm1180_vm6, %v1312_v60  ;;  %v1385_v15 = vld [vmem:[#allocation6 + $0x1b] ss:$28 sm:$0x3]  ;;  %1503 = vmatpush2.msra.mxu1 %v1420_v26  ;;  %v1417_v28 = vld [vmem:[%s2766_s5 + $0x88] sm:$0xff] }
 0x454   :  { %v1360_v18 = vrot.slane %v1352_v10, %v2641_v23  ;;  %v1386_v20 = vmax.f32 %v1383_v14, %v1385_v15  ;;  %1504 = vmatprep.subr.mxu1 %v1944_v53  ;;  %v1418_v27 = vld [vmem:[%s2766_s5 + $0x90] sm:$0xff]  ;;  %v1416_v59 = vld [vmem:[%s2766_s5 + $0x80] sm:$0xff]  ;;  %v1522_v39 = vld [vmem:[%s2768_s7 + $0x18] sm:$0xff] }
 0x455   :  { %1327 = vrot.lane.b32.xlu1 %v1326_v63, %s1943_s27  ;;  %1195 = vrot.lane.b32.xlu0 %v1194_v0, %s1943_s27  ;;  %v1521_v40 = vld [vmem:[%s2768_s7 + $0x10] sm:$0xff]  ;;  %v1520_v41 = vld [vmem:[%s2768_s7 + $0x8] sm:$0xff] }
 0x456   :  { %v1394_v24 = vrot.slane %v1386_v20, %v2641_v23  ;;  %v1419_v23 = vld [vmem:[%s2766_s5 + $0x98] sm:$0xff]  ;;  %1883 = vmatpush3.msra.mxu0 %v1522_v39  ;;  %v1519_v43 = vld [vmem:[%s2768_s7] sm:$0xff]  ;;  %v1606_v49 = vld [vmem:[%s2770_s9 + $0x8] sm:$0xff] }
 0x457   :  { %1505 = vmatpush2.msra.mxu1 %v1419_v23  ;;  %1884 = vmatprep.subr.mxu0 %v1944_v53  ;;  %v1771_v44 = vld [vmem:[%s2767_s6] ss:$0 sm:$0xff] }
 0x458   :  { %1506 = vmatprep.subr.mxu1 %v1944_v53  ;;  %1885 = vmatpush3.msra.mxu0 %v1521_v40  ;;  %v1605_v50 = vld [vmem:[%s2770_s9] sm:$0xff]  ;;  %s1953_s9 = smov [#allocation8]  }
 0x459   :  { %1344 = vrot.lane.b32.xlu1 %v1343_v8, %s1947_s19  ;;  %1231 = vrot.lane.b32.xlu0 %v1230_v9, %s1950_s29  ;;  %v1774_v51 = vld [vmem:[%s2769_s8] ss:$0 sm:$0xff]  ;;  %s1695_s15 = sshll.u32 %s1953_s9, 4  ;;  %s1696_s15 = int_to_ptr.vmem [resolvable:$true] %s1695_s15 }
 0x45a   :  { %1507 = vmatpush2.msra.mxu1 %v1418_v27  ;;  %1886 = vmatprep.subr.mxu0 %v1944_v53  ;;  %v1776_v57 = vld [vmem:[%s2771_s10] ss:$0 sm:$0xff]  ;;  %s1918_s8 = scalar_lea.vmem %s1696_s15, 32  ;;  %p1923_p1 = scmp.lt.s32.totalorder %s1696_s15, %s1696_s15 }
 0x45b   :  { %1508 = vmatprep.subr.mxu1 %v1944_v53  ;;  %1887 = vmatpush3.msra.mxu0 %v1520_v41  ;;  %p1919_p0 = scmp.ne.s32.totalorder %s1696_s15, %s1918_s8  ;;  %p1924_p2 = scmp.lt.s32.totalorder %s1918_s8, %s1918_s8 }
 0x45c   :  { %1509 = vmatpush2.msra.mxu1 %v1417_v28  ;;  %1888 = vmatprep.subr.mxu0 %v1944_v53 }
 0x45d   :  { %1361 = vrot.lane.b32.xlu1 %v1360_v18, %s1950_s29  ;;  %1303 = vrot.lane.b32.xlu0 %v1302_v19, %s1951_s4  ;;  %p1925_p3 = por %p1924_p2, %p1923_p1 }
 0x45e   :  { %1510 = vmatprep.subr.mxu1 %v1944_v53  ;;  %1889 = vmatpush3.msra.mxu0 %v1519_v43 }
 0x45f   :  { %1511 = vmatpush2.msra.mxu1 %v1416_v59  ;;  %1893 = vmatprep.subr.mxu0 %v1944_v53  ;;  %p1926_p4 = pnand %p1925_p3, %p1919_p0 }
 0x461   :  { %1395 = vrot.lane.b32.xlu1 %v1394_v24, %s1948_s20 }
 0x4bb   :  { %v1250_v42 = vpop.permute.xlu0 %1249 }
 0x4bd   :  { %v1214_v12 = vpop.permute.xlu1 %1213 }
 0x4bf   :  { %v1268_v13 = vpop.permute.xlu0 %1267 }
 0x4c3   :  { %v1286_v29 = vpop.permute.xlu0 %1285  ;;  %v1379_v30 = vpop.permute.xlu1 %1378 }
 0x4c7   :  { %v1328_v17 = vpop.permute.xlu1 %1327  ;;  %v1196_v31 = vpop.permute.xlu0 %1195 }
 0x4c8   :  { %1330 = vst.msk [vmem:[#allocation7 + $0x2] sm:$0x3] %vm1198_vm7, %v1328_v17  ;;  %1199 = vst.msk [vmem:[#allocation7] sm:$0x3] %vm1198_vm7, %v1196_v31 }
 0x4c9   :  { %1217 = vst.msk [vmem:[#allocation7] sm:$0x3] %vm1216_vm8, %v1214_v12 }
 0x4cb   :  { %v1345_v32 = vpop.permute.xlu1 %1344  ;;  %v1232_v33 = vpop.permute.xlu0 %1231 }
 0x4cc   :  { %1347 = vst.msk [vmem:[#allocation7 + $0x2] sm:$0x3] %vm1216_vm8, %v1345_v32 }
 0x4cd   :  { %1235 = vst.msk [vmem:[#allocation7] sm:$0x3] %vm1234_vm9, %v1232_v33 }
 0x4ce   :  { %1253 = vst.msk [vmem:[#allocation7] sm:$0x3] %vm1252_vm10, %v1250_v42 }
 0x4cf   :  { %1271 = vst.msk [vmem:[#allocation7] sm:$0x3] %vm1270_vm11, %v1268_v13  ;;  %v1362_v34 = vpop.permute.xlu1 %1361  ;;  %v1304_v35 = vpop.permute.xlu0 %1303 }
 0x4d0   :  { %1289 = vst.msk [vmem:[#allocation7] sm:$0x3] %vm1288_vm12, %v1286_v29 }
 0x4d1   :  { %1364 = vst.msk [vmem:[#allocation7 + $0x2] sm:$0x3] %vm1234_vm9, %v1362_v34 }
 0x4d2   :  { %1307 = vst.msk [vmem:[#allocation7] sm:$0x3] %vm1306_vm13, %v1304_v35 }
 0x4d3   :  { %1381 = vst.msk [vmem:[#allocation7 + $0x2] sm:$0x3] %vm1252_vm10, %v1379_v30  ;;  %v1396_v36 = vpop.permute.xlu1 %1395 }
 0x4d4   :  { %1398 = vst.msk [vmem:[#allocation7 + $0x2] sm:$0x3] %vm1270_vm11, %v1396_v36 }
 0x4db   :  { %v1772_v37 = vld.sshfl [vmem:[#allocation7] sm:$0x33 pattern:$0x76325410] }
 0x4dc   :  { %v1443_v38 = vcombine.high %v1772_v37, %v1772_v37 }
 0x4de   :  { %1773 = vmatprep.mubr.msk.f32.mxu1 %vm1445_vm14, %v1443_v38 }
 0x4df   :  { %1513 = vmatmul.mubr.f32.vlgmr.msra.gmra.mxu1 %v1772_v37 }
 0x59f   :  { %v1514_v45 = vpop.f32.mrf.mxu1 }
 0x5a0   :  { %v1515_v46 = vadd.f32 %v1771_v44, %v1514_v45 }
 0x5a1   :  { %v1516_v47 = vpop.f32.mrf.mxu1 }
 0x5a2   :  { %1914 = vtanh.f32 %v1515_v46 }
 0x5af   :  { %v1915_v48 = vpop.eup %1914 }
 0x5b0   :  { %1891 = vmatmul.mubr.msk.f32.vlgmr.msra.gmra.mxu0 %vm1530_vm0, %v1915_v48 }
 0x5b1   :  { %1897 = vmatprep.mubr.msk.f32.mxu0 %vm1952_vm15, %v1944_v53  ;;  %1894 = vmatpush3.msra.mxu0 %v1606_v49 }
 0x5b2   :  { %1895 = vmatprep.subr.mxu0 %v1944_v53 }
 0x5b3   :  { %1896 = vmatpush3.msra.mxu0 %v1605_v50 }
 0x670   :  { %v1600_v52 = vpop.f32.mrf.mxu0 }
 0x671   :  { %v1601_v54 = vadd.f32 %v1774_v51, %v1600_v52 }
 0x672   :  { %v1892_v55 = vpop.f32.mrf.mxu0 }
 0x673   :  { %1916 = vtanh.f32 %v1601_v54 }
 0x680   :  { %v1917_v56 = vpop.eup %1916 }
 0x681   :  { %1898 = vmatmul.mubr.msk.f32.vlgmr.msra.gmra.mxu0 %vm627_vm1, %v1917_v56 }
 0x741   :  { %v1683_v58 = vpop.f32.mrf.mxu0 }
 0x742   :  { %v1684_v53 = vadd.f32 %v1776_v57, %v1683_v58 }
 0x743   :  { %v1899_v60 = vpop.f32.mrf.mxu0 }
 0x744   :  { %1688 = vst.msk [vmem:[#allocation8] sm:$0x3] %vm1687_vm2, %v1684_v53 }
 0x745   :  { %1929 = shalt.err (!%p1926_p4)
}
 0x746   :  { %1698 = dma.vmem_to_hbm [thread:$0]  %s1696_s15, 32, %s2772_s11, [#allocation9]  }
 0x747   :  { %1938 = dma.done.wait [#allocation9], 32  }
 0x748   :  { %1939 = vsyncadd [#allocation9], 4294967264 }
 0x749   :  { %1702 = vsyncpa [#allocation9], 1 }

</bundles_post_ra>
